<compile_context>
chip_gen: v7x
topology: tpu7x:2x2x1
jax: 0.10.0
libtpu: 0.0.40
codegen_flags: <defaults>
</compile_context>

<pallas_src>
import jax
import jax.numpy as jnp
from jax import lax
from jax.experimental import pallas as pl
from jax.experimental.pallas import tpu as pltpu
import numpy as np

# ---------------- model config (small, consistent with the module) -------------
BATCH = 4
SEQ = 8                 # sequence_length (global in the PyTorch file)
INPUT_SIZE = 16
HIDDEN = 32
NUM_LAYERS = 2
NUM_CLASSES = 10

_vmem = pl.BlockSpec(memory_space=pltpu.MemorySpace.VMEM)


# ---------------------------- fused kernel --------------------------------------
def gru_fused_kernel(x_ref,
                     w_ih0_ref, w_hh0_ref, b_ih0_ref, b_hh0_ref,
                     w_ih1_ref, w_hh1_ref, b_ih1_ref, b_hh1_ref,
                     fc_w_ref, fc_b_ref,
                     out_ref):
    """Fused 2-layer GRU (wavefront-interleaved) + FC.

    x_ref    : (S*Bp, IN)  time-major flattened, batch padded to Bp     VMEM
    w_ih*    : (in_dim, 3H), w_hh*: (H, 3H), b_*: (1, 3H)               VMEM
    fc_w_ref : (S*H, C), fc_b_ref: (1, C)                               VMEM
    out_ref  : (Bp, C)                                                  VMEM
    """
    H = w_hh0_ref.shape[0]
    Bp = out_ref.shape[0]
    S = x_ref.shape[0] // Bp

    w_hh0 = w_hh0_ref[...]
    w_ih1 = w_ih1_ref[...]
    w_hh1 = w_hh1_ref[...]
    # Hoisted broadcasts (JAX does not CSE broadcast_in_dim; do them once).
    b_hh0 = jnp.broadcast_to(b_hh0_ref[...], (Bp, 3 * H))
    b_ih1 = jnp.broadcast_to(b_ih1_ref[...], (Bp, 3 * H))
    b_hh1 = jnp.broadcast_to(b_hh1_ref[...], (Bp, 3 * H))

    # Layer-0 input projection hoisted off the recurrence: one tall matmul.
    gx0 = jnp.dot(x_ref[...], w_ih0_ref[...],
                  preferred_element_type=jnp.float32) + b_ih0_ref[...]

    def sigmoid(v):                       # 1 EUP tanh instead of exp + divide
        return 0.5 * jnp.tanh(0.5 * v) + 0.5

    def gru_cell(gx, gh, h_prev):
        # r and z share one activation over the contiguous 2H-wide block.
        rz = sigmoid(gx[:, :2 * H] + gh[:, :2 * H])
        r = rz[:, :H]
        z = rz[:, H:]
        n = jnp.tanh(gx[:, 2 * H:] + r * gh[:, 2 * H:])
        return n + z * (h_prev - n)       # == (1-z)*n + z*h_prev

    zeros_h = jnp.zeros((Bp, H), jnp.float32)
    h0 = zeros_h
    h1 = zeros_h
    h0_hist = []
    h1_hist = []

    # Wavefront over the fully unrolled time axis: wave w issues layer-0 step w
    # and layer-1 step w-1; the two chains are independent within a wave, so
    # their MXU/EUP latencies hide in each other's slack.
    for w in range(S + 1):
        if w < S:                                     # ---- layer-0 step w
            gx_t = gx0[w * Bp:(w + 1) * Bp, :]        # sublane-aligned static slice
            if w == 0:
                gh0 = b_hh0                           # h == 0  =>  h @ W_hh == 0
            else:
                gh0 = jnp.dot(h0, w_hh0, preferred_element_type=jnp.float32) + b_hh0
            h0 = gru_cell(gx_t, gh0, h0)
            h0_hist.append(h0)
        if w >= 1:                                    # ---- layer-1 step w-1
            t = w - 1
            # Per-step layer-1 input projection: depends only on h0_t, so it is
            # off layer-1's recurrent chain and overlaps with layer-0 step w.
            gx1_t = jnp.dot(h0_hist[t], w_ih1,
                            preferred_element_type=jnp.float32) + b_ih1
            if t == 0:
                gh1 = b_hh1
            else:
                gh1 = jnp.dot(h1, w_hh1, preferred_element_type=jnp.float32) + b_hh1
            h1 = gru_cell(gx1_t, gh1, h1)
            h1_hist.append(h1)

    # Lane-dense (Bp, S*H) slab built as a value (no scratch round-trip) -> FC.
    hcat = jnp.concatenate(h1_hist, axis=1)
    out_ref[...] = (jnp.dot(hcat, fc_w_ref[...],
                            preferred_element_type=jnp.float32) + fc_b_ref[...])


# ---------------------------- wrapper --------------------------------------------
def rnn_gru_forward(x, params):
    """x: (batch, seq, input_size) f32  ->  (batch, num_classes) f32."""
    B, S, IN = x.shape
    H = params["gru"][0]["w_hh_t"].shape[0]
    C = params["fc_b"].shape[-1]

    # Pad batch to a full 8-row sublane group so every per-step gate slice in
    # the kernel is tile-aligned (padded rows are zeros and discarded below).
    Bp = ((B + 7) // 8) * 8
    if Bp != B:
        x_p = jnp.zeros((Bp, S, IN), x.dtype).at[:B, :, :].set(x)
    else:
        x_p = x

    # Tiny time-major flatten so per-step rows are contiguous in-kernel.
    x_tm = jnp.transpose(x_p, (1, 0, 2)).reshape(S * Bp, IN)

    l0, l1 = params["gru"]
    out = pl.pallas_call(
        gru_fused_kernel,
        out_shape=jax.ShapeDtypeStruct((Bp, C), jnp.float32),
        in_specs=[_vmem] * 11,
        out_specs=_vmem,
    )(x_tm,
      l0["w_ih_t"], l0["w_hh_t"], l0["b_ih"], l0["b_hh"],
      l1["w_ih_t"], l1["w_hh_t"], l1["b_ih"], l1["b_hh"],
      params["fc_w_t"], params["fc_b"])
    return out[:B]


# ---------------------------- parameter init --------------------------------------
def init_params(key):
    params = {"gru": []}
    k = 1.0 / np.sqrt(HIDDEN)
    in_dim = INPUT_SIZE
    for _ in range(NUM_LAYERS):
        key, k1, k2, k3, k4 = jax.random.split(key, 5)
        # PyTorch nn.GRU layout: weight_ih (3H, in), weight_hh (3H, H), gates [r,z,n]
        w_ih = jax.random.uniform(k1, (3 * HIDDEN, in_dim), jnp.float32, -k, k)
        w_hh = jax.random.uniform(k2, (3 * HIDDEN, HIDDEN), jnp.float32, -k, k)
        b_ih = jax.random.uniform(k3, (3 * HIDDEN,), jnp.float32, -k, k)
        b_hh = jax.random.uniform(k4, (3 * HIDDEN,), jnp.float32, -k, k)
        params["gru"].append({
            "w_ih_t": jnp.asarray(w_ih.T),                      # (in_dim, 3H)
            "w_hh_t": jnp.asarray(w_hh.T),                      # (H, 3H)
            "b_ih": b_ih.reshape(1, 3 * HIDDEN),
            "b_hh": b_hh.reshape(1, 3 * HIDDEN),                # kept separate: r*(Wh+b_hn)
        })
        in_dim = HIDDEN
    key, k5, k6 = jax.random.split(key, 3)
    kf = 1.0 / np.sqrt(HIDDEN * SEQ)
    fc_w = jax.random.uniform(k5, (NUM_CLASSES, HIDDEN * SEQ), jnp.float32, -kf, kf)
    fc_b = jax.random.uniform(k6, (NUM_CLASSES,), jnp.float32, -kf, kf)
    params["fc_w_t"] = jnp.asarray(fc_w.T)                      # (seq*H, classes)
    params["fc_b"] = fc_b.reshape(1, NUM_CLASSES)
    return params


# ---------------------------- pure-JAX reference -----------------------------------
def reference_forward(x, params):
    B = x.shape[0]
    h_seq = jnp.transpose(x, (1, 0, 2))       # (S, B, in)
    for layer in params["gru"]:
        w_ih, w_hh = layer["w_ih_t"], layer["w_hh_t"]
        b_ih, b_hh = layer["b_ih"], layer["b_hh"]
        H = w_hh.shape[0]

        def step(h, x_t):
            gx = x_t @ w_ih + b_ih
            gh = h @ w_hh + b_hh
            r = jax.nn.sigmoid(gx[:, :H] + gh[:, :H])
            z = jax.nn.sigmoid(gx[:, H:2 * H] + gh[:, H:2 * H])
            n = jnp.tanh(gx[:, 2 * H:] + r * gh[:, 2 * H:])
            h_new = (1.0 - z) * n + z * h
            return h_new, h_new

        _, h_seq = lax.scan(step, jnp.zeros((B, H), jnp.float32), h_seq)
    out = jnp.transpose(h_seq, (1, 0, 2)).reshape(B, -1)   # (B, S*H), PyTorch concat order
    return out @ params["fc_w_t"] + params["fc_b"]


# ---------------------------- main --------------------------------------------------
if __name__ == "__main__":
    key = jax.random.PRNGKey(0)
    key, kx, kp = jax.random.split(key, 3)
    x = jax.random.normal(kx, (BATCH, SEQ, INPUT_SIZE), jnp.float32)
    params = init_params(kp)

    fwd = jax.jit(rnn_gru_forward)
    out = jax.block_until_ready(fwd(x, params))

    ref = jax.block_until_ready(reference_forward(x, params))
    assert out.shape == (BATCH, NUM_CLASSES)
    np.testing.assert_allclose(np.asarray(out), np.asarray(ref), rtol=1e-3, atol=1e-3)

    print("KERNEL_OK")
</pallas_src>

<mosaic_0001>
module attributes {stable_mosaic.version = 11 : i64} {
  func.func @gru_fused_kernel(%arg0: memref<64x16xf32, #tpu.memory_space<vmem>>, %arg1: memref<16x96xf32, #tpu.memory_space<vmem>>, %arg2: memref<32x96xf32, #tpu.memory_space<vmem>>, %arg3: memref<1x96xf32, #tpu.memory_space<vmem>>, %arg4: memref<1x96xf32, #tpu.memory_space<vmem>>, %arg5: memref<32x96xf32, #tpu.memory_space<vmem>>, %arg6: memref<32x96xf32, #tpu.memory_space<vmem>>, %arg7: memref<1x96xf32, #tpu.memory_space<vmem>>, %arg8: memref<1x96xf32, #tpu.memory_space<vmem>>, %arg9: memref<256x10xf32, #tpu.memory_space<vmem>>, %arg10: memref<1x10xf32, #tpu.memory_space<vmem>>, %arg11: memref<8x10xf32, #tpu.memory_space<vmem>>) attributes {dimension_semantics = [], scalar_prefetch = 0 : i64, scratch_operands = 0 : i64, tpu.core_type = #tpu.core_type<tc>} {
    %c0 = arith.constant 0 : index
    %c0_0 = arith.constant 0 : index
    %0 = vector.load %arg2[%c0, %c0_0] : memref<32x96xf32, #tpu.memory_space<vmem>>, vector<32x96xf32>
    %c0_1 = arith.constant 0 : index
    %c0_2 = arith.constant 0 : index
    %1 = vector.load %arg5[%c0_1, %c0_2] : memref<32x96xf32, #tpu.memory_space<vmem>>, vector<32x96xf32>
    %c0_3 = arith.constant 0 : index
    %c0_4 = arith.constant 0 : index
    %2 = vector.load %arg6[%c0_3, %c0_4] : memref<32x96xf32, #tpu.memory_space<vmem>>, vector<32x96xf32>
    %c0_5 = arith.constant 0 : index
    %c0_6 = arith.constant 0 : index
    %3 = vector.load %arg4[%c0_5, %c0_6] : memref<1x96xf32, #tpu.memory_space<vmem>>, vector<1x96xf32>
    %4 = vector.shape_cast %3 : vector<1x96xf32> to vector<1x96xf32>
    %5 = vector.broadcast %4 : vector<1x96xf32> to vector<8x96xf32>
    %c0_7 = arith.constant 0 : index
    %c0_8 = arith.constant 0 : index
    %6 = vector.load %arg7[%c0_7, %c0_8] : memref<1x96xf32, #tpu.memory_space<vmem>>, vector<1x96xf32>
    %7 = vector.shape_cast %6 : vector<1x96xf32> to vector<1x96xf32>
    %8 = vector.broadcast %7 : vector<1x96xf32> to vector<8x96xf32>
    %c0_9 = arith.constant 0 : index
    %c0_10 = arith.constant 0 : index
    %9 = vector.load %arg8[%c0_9, %c0_10] : memref<1x96xf32, #tpu.memory_space<vmem>>, vector<1x96xf32>
    %10 = vector.shape_cast %9 : vector<1x96xf32> to vector<1x96xf32>
    %11 = vector.broadcast %10 : vector<1x96xf32> to vector<8x96xf32>
    %c0_11 = arith.constant 0 : index
    %c0_12 = arith.constant 0 : index
    %12 = vector.load %arg0[%c0_11, %c0_12] : memref<64x16xf32, #tpu.memory_space<vmem>>, vector<64x16xf32>
    %c0_13 = arith.constant 0 : index
    %c0_14 = arith.constant 0 : index
    %13 = vector.load %arg1[%c0_13, %c0_14] : memref<16x96xf32, #tpu.memory_space<vmem>>, vector<16x96xf32>
    %cst = arith.constant dense<0.000000e+00> : vector<64x96xf32>
    %14 = tpu.matmul %12, %13, %cst {dimension_numbers = #tpu.dot_dimension_numbers<[1], [0], [0], [1], [0, 0, 1, 1], [], []>} : vector<64x16xf32>, vector<16x96xf32>, vector<64x96xf32> -> vector<64x96xf32>
    %c0_15 = arith.constant 0 : index
    %c0_16 = arith.constant 0 : index
    %15 = vector.load %arg3[%c0_15, %c0_16] : memref<1x96xf32, #tpu.memory_space<vmem>>, vector<1x96xf32>
    %16 = vector.broadcast %15 : vector<1x96xf32> to vector<64x96xf32>
    %17 = arith.addf %14, %16 : vector<64x96xf32>
    %cst_17 = arith.constant 0.000000e+00 : f32
    %18 = vector.broadcast %cst_17 : f32 to vector<8x32xf32>
    %19 = vector.extract_strided_slice %17 {offsets = [0, 0], sizes = [8, 96], strides = [1, 1]} : vector<64x96xf32> to vector<8x96xf32>
    %20 = vector.extract_strided_slice %19 {offsets = [0, 0], sizes = [8, 64], strides = [1, 1]} : vector<8x96xf32> to vector<8x64xf32>
    %21 = vector.extract_strided_slice %5 {offsets = [0, 0], sizes = [8, 64], strides = [1, 1]} : vector<8x96xf32> to vector<8x64xf32>
    %22 = arith.addf %20, %21 : vector<8x64xf32>
    %cst_18 = arith.constant 5.000000e-01 : f32
    %23 = vector.broadcast %cst_18 : f32 to vector<8x64xf32>
    %24 = arith.mulf %23, %22 : vector<8x64xf32>
    %25 = math.tanh %24 : vector<8x64xf32>
    %cst_19 = arith.constant 5.000000e-01 : f32
    %26 = vector.broadcast %cst_19 : f32 to vector<8x64xf32>
    %27 = arith.mulf %26, %25 : vector<8x64xf32>
    %cst_20 = arith.constant 5.000000e-01 : f32
    %28 = vector.broadcast %cst_20 : f32 to vector<8x64xf32>
    %29 = arith.addf %27, %28 : vector<8x64xf32>
    %30 = vector.extract_strided_slice %29 {offsets = [0, 0], sizes = [8, 32], strides = [1, 1]} : vector<8x64xf32> to vector<8x32xf32>
    %31 = vector.extract_strided_slice %29 {offsets = [0, 32], sizes = [8, 32], strides = [1, 1]} : vector<8x64xf32> to vector<8x32xf32>
    %32 = vector.extract_strided_slice %19 {offsets = [0, 64], sizes = [8, 32], strides = [1, 1]} : vector<8x96xf32> to vector<8x32xf32>
    %33 = vector.extract_strided_slice %5 {offsets = [0, 64], sizes = [8, 32], strides = [1, 1]} : vector<8x96xf32> to vector<8x32xf32>
    %34 = arith.mulf %30, %33 : vector<8x32xf32>
    %35 = arith.addf %32, %34 : vector<8x32xf32>
    %36 = math.tanh %35 : vector<8x32xf32>
    %37 = arith.subf %18, %36 : vector<8x32xf32>
    %38 = arith.mulf %31, %37 : vector<8x32xf32>
    %39 = arith.addf %36, %38 : vector<8x32xf32>
    %40 = vector.extract_strided_slice %17 {offsets = [8, 0], sizes = [8, 96], strides = [1, 1]} : vector<64x96xf32> to vector<8x96xf32>
    %cst_21 = arith.constant dense<0.000000e+00> : vector<8x96xf32>
    %41 = tpu.matmul %39, %0, %cst_21 {dimension_numbers = #tpu.dot_dimension_numbers<[1], [0], [0], [1], [0, 0, 1, 1], [], []>} : vector<8x32xf32>, vector<32x96xf32>, vector<8x96xf32> -> vector<8x96xf32>
    %42 = arith.addf %41, %5 : vector<8x96xf32>
    %43 = vector.extract_strided_slice %40 {offsets = [0, 0], sizes = [8, 64], strides = [1, 1]} : vector<8x96xf32> to vector<8x64xf32>
    %44 = vector.extract_strided_slice %42 {offsets = [0, 0], sizes = [8, 64], strides = [1, 1]} : vector<8x96xf32> to vector<8x64xf32>
    %45 = arith.addf %43, %44 : vector<8x64xf32>
    %cst_22 = arith.constant 5.000000e-01 : f32
    %46 = vector.broadcast %cst_22 : f32 to vector<8x64xf32>
    %47 = arith.mulf %46, %45 : vector<8x64xf32>
    %48 = math.tanh %47 : vector<8x64xf32>
    %cst_23 = arith.constant 5.000000e-01 : f32
    %49 = vector.broadcast %cst_23 : f32 to vector<8x64xf32>
    %50 = arith.mulf %49, %48 : vector<8x64xf32>
    %cst_24 = arith.constant 5.000000e-01 : f32
    %51 = vector.broadcast %cst_24 : f32 to vector<8x64xf32>
    %52 = arith.addf %50, %51 : vector<8x64xf32>
    %53 = vector.extract_strided_slice %52 {offsets = [0, 0], sizes = [8, 32], strides = [1, 1]} : vector<8x64xf32> to vector<8x32xf32>
    %54 = vector.extract_strided_slice %52 {offsets = [0, 32], sizes = [8, 32], strides = [1, 1]} : vector<8x64xf32> to vector<8x32xf32>
    %55 = vector.extract_strided_slice %40 {offsets = [0, 64], sizes = [8, 32], strides = [1, 1]} : vector<8x96xf32> to vector<8x32xf32>
    %56 = vector.extract_strided_slice %42 {offsets = [0, 64], sizes = [8, 32], strides = [1, 1]} : vector<8x96xf32> to vector<8x32xf32>
    %57 = arith.mulf %53, %56 : vector<8x32xf32>
    %58 = arith.addf %55, %57 : vector<8x32xf32>
    %59 = math.tanh %58 : vector<8x32xf32>
    %60 = arith.subf %39, %59 : vector<8x32xf32>
    %61 = arith.mulf %54, %60 : vector<8x32xf32>
    %62 = arith.addf %59, %61 : vector<8x32xf32>
    %cst_25 = arith.constant dense<0.000000e+00> : vector<8x96xf32>
    %63 = tpu.matmul %39, %1, %cst_25 {dimension_numbers = #tpu.dot_dimension_numbers<[1], [0], [0], [1], [0, 0, 1, 1], [], []>} : vector<8x32xf32>, vector<32x96xf32>, vector<8x96xf32> -> vector<8x96xf32>
    %64 = arith.addf %63, %8 : vector<8x96xf32>
    %65 = vector.extract_strided_slice %64 {offsets = [0, 0], sizes = [8, 64], strides = [1, 1]} : vector<8x96xf32> to vector<8x64xf32>
    %66 = vector.extract_strided_slice %11 {offsets = [0, 0], sizes = [8, 64], strides = [1, 1]} : vector<8x96xf32> to vector<8x64xf32>
    %67 = arith.addf %65, %66 : vector<8x64xf32>
    %cst_26 = arith.constant 5.000000e-01 : f32
    %68 = vector.broadcast %cst_26 : f32 to vector<8x64xf32>
    %69 = arith.mulf %68, %67 : vector<8x64xf32>
    %70 = math.tanh %69 : vector<8x64xf32>
    %cst_27 = arith.constant 5.000000e-01 : f32
    %71 = vector.broadcast %cst_27 : f32 to vector<8x64xf32>
    %72 = arith.mulf %71, %70 : vector<8x64xf32>
    %cst_28 = arith.constant 5.000000e-01 : f32
    %73 = vector.broadcast %cst_28 : f32 to vector<8x64xf32>
    %74 = arith.addf %72, %73 : vector<8x64xf32>
    %75 = vector.extract_strided_slice %74 {offsets = [0, 0], sizes = [8, 32], strides = [1, 1]} : vector<8x64xf32> to vector<8x32xf32>
    %76 = vector.extract_strided_slice %74 {offsets = [0, 32], sizes = [8, 32], strides = [1, 1]} : vector<8x64xf32> to vector<8x32xf32>
    %77 = vector.extract_strided_slice %64 {offsets = [0, 64], sizes = [8, 32], strides = [1, 1]} : vector<8x96xf32> to vector<8x32xf32>
    %78 = vector.extract_strided_slice %11 {offsets = [0, 64], sizes = [8, 32], strides = [1, 1]} : vector<8x96xf32> to vector<8x32xf32>
    %79 = arith.mulf %75, %78 : vector<8x32xf32>
    %80 = arith.addf %77, %79 : vector<8x32xf32>
    %81 = math.tanh %80 : vector<8x32xf32>
    %82 = arith.subf %18, %81 : vector<8x32xf32>
    %83 = arith.mulf %76, %82 : vector<8x32xf32>
    %84 = arith.addf %81, %83 : vector<8x32xf32>
    %85 = vector.extract_strided_slice %17 {offsets = [16, 0], sizes = [8, 96], strides = [1, 1]} : vector<64x96xf32> to vector<8x96xf32>
    %cst_29 = arith.constant dense<0.000000e+00> : vector<8x96xf32>
    %86 = tpu.matmul %62, %0, %cst_29 {dimension_numbers = #tpu.dot_dimension_numbers<[1], [0], [0], [1], [0, 0, 1, 1], [], []>} : vector<8x32xf32>, vector<32x96xf32>, vector<8x96xf32> -> vector<8x96xf32>
    %87 = arith.addf %86, %5 : vector<8x96xf32>
    %88 = vector.extract_strided_slice %85 {offsets = [0, 0], sizes = [8, 64], strides = [1, 1]} : vector<8x96xf32> to vector<8x64xf32>
    %89 = vector.extract_strided_slice %87 {offsets = [0, 0], sizes = [8, 64], strides = [1, 1]} : vector<8x96xf32> to vector<8x64xf32>
    %90 = arith.addf %88, %89 : vector<8x64xf32>
    %cst_30 = arith.constant 5.000000e-01 : f32
    %91 = vector.broadcast %cst_30 : f32 to vector<8x64xf32>
    %92 = arith.mulf %91, %90 : vector<8x64xf32>
    %93 = math.tanh %92 : vector<8x64xf32>
    %cst_31 = arith.constant 5.000000e-01 : f32
    %94 = vector.broadcast %cst_31 : f32 to vector<8x64xf32>
    %95 = arith.mulf %94, %93 : vector<8x64xf32>
    %cst_32 = arith.constant 5.000000e-01 : f32
    %96 = vector.broadcast %cst_32 : f32 to vector<8x64xf32>
    %97 = arith.addf %95, %96 : vector<8x64xf32>
    %98 = vector.extract_strided_slice %97 {offsets = [0, 0], sizes = [8, 32], strides = [1, 1]} : vector<8x64xf32> to vector<8x32xf32>
    %99 = vector.extract_strided_slice %97 {offsets = [0, 32], sizes = [8, 32], strides = [1, 1]} : vector<8x64xf32> to vector<8x32xf32>
    %100 = vector.extract_strided_slice %85 {offsets = [0, 64], sizes = [8, 32], strides = [1, 1]} : vector<8x96xf32> to vector<8x32xf32>
    %101 = vector.extract_strided_slice %87 {offsets = [0, 64], sizes = [8, 32], strides = [1, 1]} : vector<8x96xf32> to vector<8x32xf32>
    %102 = arith.mulf %98, %101 : vector<8x32xf32>
    %103 = arith.addf %100, %102 : vector<8x32xf32>
    %104 = math.tanh %103 : vector<8x32xf32>
    %105 = arith.subf %62, %104 : vector<8x32xf32>
    %106 = arith.mulf %99, %105 : vector<8x32xf32>
    %107 = arith.addf %104, %106 : vector<8x32xf32>
    %cst_33 = arith.constant dense<0.000000e+00> : vector<8x96xf32>
    %108 = tpu.matmul %62, %1, %cst_33 {dimension_numbers = #tpu.dot_dimension_numbers<[1], [0], [0], [1], [0, 0, 1, 1], [], []>} : vector<8x32xf32>, vector<32x96xf32>, vector<8x96xf32> -> vector<8x96xf32>
    %109 = arith.addf %108, %8 : vector<8x96xf32>
    %cst_34 = arith.constant dense<0.000000e+00> : vector<8x96xf32>
    %110 = tpu.matmul %84, %2, %cst_34 {dimension_numbers = #tpu.dot_dimension_numbers<[1], [0], [0], [1], [0, 0, 1, 1], [], []>} : vector<8x32xf32>, vector<32x96xf32>, vector<8x96xf32> -> vector<8x96xf32>
    %111 = arith.addf %110, %11 : vector<8x96xf32>
    %112 = vector.extract_strided_slice %109 {offsets = [0, 0], sizes = [8, 64], strides = [1, 1]} : vector<8x96xf32> to vector<8x64xf32>
    %113 = vector.extract_strided_slice %111 {offsets = [0, 0], sizes = [8, 64], strides = [1, 1]} : vector<8x96xf32> to vector<8x64xf32>
    %114 = arith.addf %112, %113 : vector<8x64xf32>
    %cst_35 = arith.constant 5.000000e-01 : f32
    %115 = vector.broadcast %cst_35 : f32 to vector<8x64xf32>
    %116 = arith.mulf %115, %114 : vector<8x64xf32>
    %117 = math.tanh %116 : vector<8x64xf32>
    %cst_36 = arith.constant 5.000000e-01 : f32
    %118 = vector.broadcast %cst_36 : f32 to vector<8x64xf32>
    %119 = arith.mulf %118, %117 : vector<8x64xf32>
    %cst_37 = arith.constant 5.000000e-01 : f32
    %120 = vector.broadcast %cst_37 : f32 to vector<8x64xf32>
    %121 = arith.addf %119, %120 : vector<8x64xf32>
    %122 = vector.extract_strided_slice %121 {offsets = [0, 0], sizes = [8, 32], strides = [1, 1]} : vector<8x64xf32> to vector<8x32xf32>
    %123 = vector.extract_strided_slice %121 {offsets = [0, 32], sizes = [8, 32], strides = [1, 1]} : vector<8x64xf32> to vector<8x32xf32>
    %124 = vector.extract_strided_slice %109 {offsets = [0, 64], sizes = [8, 32], strides = [1, 1]} : vector<8x96xf32> to vector<8x32xf32>
    %125 = vector.extract_strided_slice %111 {offsets = [0, 64], sizes = [8, 32], strides = [1, 1]} : vector<8x96xf32> to vector<8x32xf32>
    %126 = arith.mulf %122, %125 : vector<8x32xf32>
    %127 = arith.addf %124, %126 : vector<8x32xf32>
    %128 = math.tanh %127 : vector<8x32xf32>
    %129 = arith.subf %84, %128 : vector<8x32xf32>
    %130 = arith.mulf %123, %129 : vector<8x32xf32>
    %131 = arith.addf %128, %130 : vector<8x32xf32>
    %132 = vector.extract_strided_slice %17 {offsets = [24, 0], sizes = [8, 96], strides = [1, 1]} : vector<64x96xf32> to vector<8x96xf32>
    %cst_38 = arith.constant dense<0.000000e+00> : vector<8x96xf32>
    %133 = tpu.matmul %107, %0, %cst_38 {dimension_numbers = #tpu.dot_dimension_numbers<[1], [0], [0], [1], [0, 0, 1, 1], [], []>} : vector<8x32xf32>, vector<32x96xf32>, vector<8x96xf32> -> vector<8x96xf32>
    %134 = arith.addf %133, %5 : vector<8x96xf32>
    %135 = vector.extract_strided_slice %132 {offsets = [0, 0], sizes = [8, 64], strides = [1, 1]} : vector<8x96xf32> to vector<8x64xf32>
    %136 = vector.extract_strided_slice %134 {offsets = [0, 0], sizes = [8, 64], strides = [1, 1]} : vector<8x96xf32> to vector<8x64xf32>
    %137 = arith.addf %135, %136 : vector<8x64xf32>
    %cst_39 = arith.constant 5.000000e-01 : f32
    %138 = vector.broadcast %cst_39 : f32 to vector<8x64xf32>
    %139 = arith.mulf %138, %137 : vector<8x64xf32>
    %140 = math.tanh %139 : vector<8x64xf32>
    %cst_40 = arith.constant 5.000000e-01 : f32
    %141 = vector.broadcast %cst_40 : f32 to vector<8x64xf32>
    %142 = arith.mulf %141, %140 : vector<8x64xf32>
    %cst_41 = arith.constant 5.000000e-01 : f32
    %143 = vector.broadcast %cst_41 : f32 to vector<8x64xf32>
    %144 = arith.addf %142, %143 : vector<8x64xf32>
    %145 = vector.extract_strided_slice %144 {offsets = [0, 0], sizes = [8, 32], strides = [1, 1]} : vector<8x64xf32> to vector<8x32xf32>
    %146 = vector.extract_strided_slice %144 {offsets = [0, 32], sizes = [8, 32], strides = [1, 1]} : vector<8x64xf32> to vector<8x32xf32>
    %147 = vector.extract_strided_slice %132 {offsets = [0, 64], sizes = [8, 32], strides = [1, 1]} : vector<8x96xf32> to vector<8x32xf32>
    %148 = vector.extract_strided_slice %134 {offsets = [0, 64], sizes = [8, 32], strides = [1, 1]} : vector<8x96xf32> to vector<8x32xf32>
    %149 = arith.mulf %145, %148 : vector<8x32xf32>
    %150 = arith.addf %147, %149 : vector<8x32xf32>
    %151 = math.tanh %150 : vector<8x32xf32>
    %152 = arith.subf %107, %151 : vector<8x32xf32>
    %153 = arith.mulf %146, %152 : vector<8x32xf32>
    %154 = arith.addf %151, %153 : vector<8x32xf32>
    %cst_42 = arith.constant dense<0.000000e+00> : vector<8x96xf32>
    %155 = tpu.matmul %107, %1, %cst_42 {dimension_numbers = #tpu.dot_dimension_numbers<[1], [0], [0], [1], [0, 0, 1, 1], [], []>} : vector<8x32xf32>, vector<32x96xf32>, vector<8x96xf32> -> vector<8x96xf32>
    %156 = arith.addf %155, %8 : vector<8x96xf32>
    %cst_43 = arith.constant dense<0.000000e+00> : vector<8x96xf32>
    %157 = tpu.matmul %131, %2, %cst_43 {dimension_numbers = #tpu.dot_dimension_numbers<[1], [0], [0], [1], [0, 0, 1, 1], [], []>} : vector<8x32xf32>, vector<32x96xf32>, vector<8x96xf32> -> vector<8x96xf32>
    %158 = arith.addf %157, %11 : vector<8x96xf32>
    %159 = vector.extract_strided_slice %156 {offsets = [0, 0], sizes = [8, 64], strides = [1, 1]} : vector<8x96xf32> to vector<8x64xf32>
    %160 = vector.extract_strided_slice %158 {offsets = [0, 0], sizes = [8, 64], strides = [1, 1]} : vector<8x96xf32> to vector<8x64xf32>
    %161 = arith.addf %159, %160 : vector<8x64xf32>
    %cst_44 = arith.constant 5.000000e-01 : f32
    %162 = vector.broadcast %cst_44 : f32 to vector<8x64xf32>
    %163 = arith.mulf %162, %161 : vector<8x64xf32>
    %164 = math.tanh %163 : vector<8x64xf32>
    %cst_45 = arith.constant 5.000000e-01 : f32
    %165 = vector.broadcast %cst_45 : f32 to vector<8x64xf32>
    %166 = arith.mulf %165, %164 : vector<8x64xf32>
    %cst_46 = arith.constant 5.000000e-01 : f32
    %167 = vector.broadcast %cst_46 : f32 to vector<8x64xf32>
    %168 = arith.addf %166, %167 : vector<8x64xf32>
    %169 = vector.extract_strided_slice %168 {offsets = [0, 0], sizes = [8, 32], strides = [1, 1]} : vector<8x64xf32> to vector<8x32xf32>
    %170 = vector.extract_strided_slice %168 {offsets = [0, 32], sizes = [8, 32], strides = [1, 1]} : vector<8x64xf32> to vector<8x32xf32>
    %171 = vector.extract_strided_slice %156 {offsets = [0, 64], sizes = [8, 32], strides = [1, 1]} : vector<8x96xf32> to vector<8x32xf32>
    %172 = vector.extract_strided_slice %158 {offsets = [0, 64], sizes = [8, 32], strides = [1, 1]} : vector<8x96xf32> to vector<8x32xf32>
    %173 = arith.mulf %169, %172 : vector<8x32xf32>
    %174 = arith.addf %171, %173 : vector<8x32xf32>
    %175 = math.tanh %174 : vector<8x32xf32>
    %176 = arith.subf %131, %175 : vector<8x32xf32>
    %177 = arith.mulf %170, %176 : vector<8x32xf32>
    %178 = arith.addf %175, %177 : vector<8x32xf32>
    %179 = vector.extract_strided_slice %17 {offsets = [32, 0], sizes = [8, 96], strides = [1, 1]} : vector<64x96xf32> to vector<8x96xf32>
    %cst_47 = arith.constant dense<0.000000e+00> : vector<8x96xf32>
    %180 = tpu.matmul %154, %0, %cst_47 {dimension_numbers = #tpu.dot_dimension_numbers<[1], [0], [0], [1], [0, 0, 1, 1], [], []>} : vector<8x32xf32>, vector<32x96xf32>, vector<8x96xf32> -> vector<8x96xf32>
    %181 = arith.addf %180, %5 : vector<8x96xf32>
    %182 = vector.extract_strided_slice %179 {offsets = [0, 0], sizes = [8, 64], strides = [1, 1]} : vector<8x96xf32> to vector<8x64xf32>
    %183 = vector.extract_strided_slice %181 {offsets = [0, 0], sizes = [8, 64], strides = [1, 1]} : vector<8x96xf32> to vector<8x64xf32>
    %184 = arith.addf %182, %183 : vector<8x64xf32>
    %cst_48 = arith.constant 5.000000e-01 : f32
    %185 = vector.broadcast %cst_48 : f32 to vector<8x64xf32>
    %186 = arith.mulf %185, %184 : vector<8x64xf32>
    %187 = math.tanh %186 : vector<8x64xf32>
    %cst_49 = arith.constant 5.000000e-01 : f32
    %188 = vector.broadcast %cst_49 : f32 to vector<8x64xf32>
    %189 = arith.mulf %188, %187 : vector<8x64xf32>
    %cst_50 = arith.constant 5.000000e-01 : f32
    %190 = vector.broadcast %cst_50 : f32 to vector<8x64xf32>
    %191 = arith.addf %189, %190 : vector<8x64xf32>
    %192 = vector.extract_strided_slice %191 {offsets = [0, 0], sizes = [8, 32], strides = [1, 1]} : vector<8x64xf32> to vector<8x32xf32>
    %193 = vector.extract_strided_slice %191 {offsets = [0, 32], sizes = [8, 32], strides = [1, 1]} : vector<8x64xf32> to vector<8x32xf32>
    %194 = vector.extract_strided_slice %179 {offsets = [0, 64], sizes = [8, 32], strides = [1, 1]} : vector<8x96xf32> to vector<8x32xf32>
    %195 = vector.extract_strided_slice %181 {offsets = [0, 64], sizes = [8, 32], strides = [1, 1]} : vector<8x96xf32> to vector<8x32xf32>
    %196 = arith.mulf %192, %195 : vector<8x32xf32>
    %197 = arith.addf %194, %196 : vector<8x32xf32>
    %198 = math.tanh %197 : vector<8x32xf32>
    %199 = arith.subf %154, %198 : vector<8x32xf32>
    %200 = arith.mulf %193, %199 : vector<8x32xf32>
    %201 = arith.addf %198, %200 : vector<8x32xf32>
    %cst_51 = arith.constant dense<0.000000e+00> : vector<8x96xf32>
    %202 = tpu.matmul %154, %1, %cst_51 {dimension_numbers = #tpu.dot_dimension_numbers<[1], [0], [0], [1], [0, 0, 1, 1], [], []>} : vector<8x32xf32>, vector<32x96xf32>, vector<8x96xf32> -> vector<8x96xf32>
    %203 = arith.addf %202, %8 : vector<8x96xf32>
    %cst_52 = arith.constant dense<0.000000e+00> : vector<8x96xf32>
    %204 = tpu.matmul %178, %2, %cst_52 {dimension_numbers = #tpu.dot_dimension_numbers<[1], [0], [0], [1], [0, 0, 1, 1], [], []>} : vector<8x32xf32>, vector<32x96xf32>, vector<8x96xf32> -> vector<8x96xf32>
    %205 = arith.addf %204, %11 : vector<8x96xf32>
    %206 = vector.extract_strided_slice %203 {offsets = [0, 0], sizes = [8, 64], strides = [1, 1]} : vector<8x96xf32> to vector<8x64xf32>
    %207 = vector.extract_strided_slice %205 {offsets = [0, 0], sizes = [8, 64], strides = [1, 1]} : vector<8x96xf32> to vector<8x64xf32>
    %208 = arith.addf %206, %207 : vector<8x64xf32>
    %cst_53 = arith.constant 5.000000e-01 : f32
    %209 = vector.broadcast %cst_53 : f32 to vector<8x64xf32>
    %210 = arith.mulf %209, %208 : vector<8x64xf32>
    %211 = math.tanh %210 : vector<8x64xf32>
    %cst_54 = arith.constant 5.000000e-01 : f32
    %212 = vector.broadcast %cst_54 : f32 to vector<8x64xf32>
    %213 = arith.mulf %212, %211 : vector<8x64xf32>
    %cst_55 = arith.constant 5.000000e-01 : f32
    %214 = vector.broadcast %cst_55 : f32 to vector<8x64xf32>
    %215 = arith.addf %213, %214 : vector<8x64xf32>
    %216 = vector.extract_strided_slice %215 {offsets = [0, 0], sizes = [8, 32], strides = [1, 1]} : vector<8x64xf32> to vector<8x32xf32>
    %217 = vector.extract_strided_slice %215 {offsets = [0, 32], sizes = [8, 32], strides = [1, 1]} : vector<8x64xf32> to vector<8x32xf32>
    %218 = vector.extract_strided_slice %203 {offsets = [0, 64], sizes = [8, 32], strides = [1, 1]} : vector<8x96xf32> to vector<8x32xf32>
    %219 = vector.extract_strided_slice %205 {offsets = [0, 64], sizes = [8, 32], strides = [1, 1]} : vector<8x96xf32> to vector<8x32xf32>
    %220 = arith.mulf %216, %219 : vector<8x32xf32>
    %221 = arith.addf %218, %220 : vector<8x32xf32>
    %222 = math.tanh %221 : vector<8x32xf32>
    %223 = arith.subf %178, %222 : vector<8x32xf32>
    %224 = arith.mulf %217, %223 : vector<8x32xf32>
    %225 = arith.addf %222, %224 : vector<8x32xf32>
    %226 = vector.extract_strided_slice %17 {offsets = [40, 0], sizes = [8, 96], strides = [1, 1]} : vector<64x96xf32> to vector<8x96xf32>
    %cst_56 = arith.constant dense<0.000000e+00> : vector<8x96xf32>
    %227 = tpu.matmul %201, %0, %cst_56 {dimension_numbers = #tpu.dot_dimension_numbers<[1], [0], [0], [1], [0, 0, 1, 1], [], []>} : vector<8x32xf32>, vector<32x96xf32>, vector<8x96xf32> -> vector<8x96xf32>
    %228 = arith.addf %227, %5 : vector<8x96xf32>
    %229 = vector.extract_strided_slice %226 {offsets = [0, 0], sizes = [8, 64], strides = [1, 1]} : vector<8x96xf32> to vector<8x64xf32>
    %230 = vector.extract_strided_slice %228 {offsets = [0, 0], sizes = [8, 64], strides = [1, 1]} : vector<8x96xf32> to vector<8x64xf32>
    %231 = arith.addf %229, %230 : vector<8x64xf32>
    %cst_57 = arith.constant 5.000000e-01 : f32
    %232 = vector.broadcast %cst_57 : f32 to vector<8x64xf32>
    %233 = arith.mulf %232, %231 : vector<8x64xf32>
    %234 = math.tanh %233 : vector<8x64xf32>
    %cst_58 = arith.constant 5.000000e-01 : f32
    %235 = vector.broadcast %cst_58 : f32 to vector<8x64xf32>
    %236 = arith.mulf %235, %234 : vector<8x64xf32>
    %cst_59 = arith.constant 5.000000e-01 : f32
    %237 = vector.broadcast %cst_59 : f32 to vector<8x64xf32>
    %238 = arith.addf %236, %237 : vector<8x64xf32>
    %239 = vector.extract_strided_slice %238 {offsets = [0, 0], sizes = [8, 32], strides = [1, 1]} : vector<8x64xf32> to vector<8x32xf32>
    %240 = vector.extract_strided_slice %238 {offsets = [0, 32], sizes = [8, 32], strides = [1, 1]} : vector<8x64xf32> to vector<8x32xf32>
    %241 = vector.extract_strided_slice %226 {offsets = [0, 64], sizes = [8, 32], strides = [1, 1]} : vector<8x96xf32> to vector<8x32xf32>
    %242 = vector.extract_strided_slice %228 {offsets = [0, 64], sizes = [8, 32], strides = [1, 1]} : vector<8x96xf32> to vector<8x32xf32>
    %243 = arith.mulf %239, %242 : vector<8x32xf32>
    %244 = arith.addf %241, %243 : vector<8x32xf32>
    %245 = math.tanh %244 : vector<8x32xf32>
    %246 = arith.subf %201, %245 : vector<8x32xf32>
    %247 = arith.mulf %240, %246 : vector<8x32xf32>
    %248 = arith.addf %245, %247 : vector<8x32xf32>
    %cst_60 = arith.constant dense<0.000000e+00> : vector<8x96xf32>
    %249 = tpu.matmul %201, %1, %cst_60 {dimension_numbers = #tpu.dot_dimension_numbers<[1], [0], [0], [1], [0, 0, 1, 1], [], []>} : vector<8x32xf32>, vector<32x96xf32>, vector<8x96xf32> -> vector<8x96xf32>
    %250 = arith.addf %249, %8 : vector<8x96xf32>
    %cst_61 = arith.constant dense<0.000000e+00> : vector<8x96xf32>
    %251 = tpu.matmul %225, %2, %cst_61 {dimension_numbers = #tpu.dot_dimension_numbers<[1], [0], [0], [1], [0, 0, 1, 1], [], []>} : vector<8x32xf32>, vector<32x96xf32>, vector<8x96xf32> -> vector<8x96xf32>
    %252 = arith.addf %251, %11 : vector<8x96xf32>
    %253 = vector.extract_strided_slice %250 {offsets = [0, 0], sizes = [8, 64], strides = [1, 1]} : vector<8x96xf32> to vector<8x64xf32>
    %254 = vector.extract_strided_slice %252 {offsets = [0, 0], sizes = [8, 64], strides = [1, 1]} : vector<8x96xf32> to vector<8x64xf32>
    %255 = arith.addf %253, %254 : vector<8x64xf32>
    %cst_62 = arith.constant 5.000000e-01 : f32
    %256 = vector.broadcast %cst_62 : f32 to vector<8x64xf32>
    %257 = arith.mulf %256, %255 : vector<8x64xf32>
    %258 = math.tanh %257 : vector<8x64xf32>
    %cst_63 = arith.constant 5.000000e-01 : f32
    %259 = vector.broadcast %cst_63 : f32 to vector<8x64xf32>
    %260 = arith.mulf %259, %258 : vector<8x64xf32>
    %cst_64 = arith.constant 5.000000e-01 : f32
    %261 = vector.broadcast %cst_64 : f32 to vector<8x64xf32>
    %262 = arith.addf %260, %261 : vector<8x64xf32>
    %263 = vector.extract_strided_slice %262 {offsets = [0, 0], sizes = [8, 32], strides = [1, 1]} : vector<8x64xf32> to vector<8x32xf32>
    %264 = vector.extract_strided_slice %262 {offsets = [0, 32], sizes = [8, 32], strides = [1, 1]} : vector<8x64xf32> to vector<8x32xf32>
    %265 = vector.extract_strided_slice %250 {offsets = [0, 64], sizes = [8, 32], strides = [1, 1]} : vector<8x96xf32> to vector<8x32xf32>
    %266 = vector.extract_strided_slice %252 {offsets = [0, 64], sizes = [8, 32], strides = [1, 1]} : vector<8x96xf32> to vector<8x32xf32>
    %267 = arith.mulf %263, %266 : vector<8x32xf32>
    %268 = arith.addf %265, %267 : vector<8x32xf32>
    %269 = math.tanh %268 : vector<8x32xf32>
    %270 = arith.subf %225, %269 : vector<8x32xf32>
    %271 = arith.mulf %264, %270 : vector<8x32xf32>
    %272 = arith.addf %269, %271 : vector<8x32xf32>
    %273 = vector.extract_strided_slice %17 {offsets = [48, 0], sizes = [8, 96], strides = [1, 1]} : vector<64x96xf32> to vector<8x96xf32>
    %cst_65 = arith.constant dense<0.000000e+00> : vector<8x96xf32>
    %274 = tpu.matmul %248, %0, %cst_65 {dimension_numbers = #tpu.dot_dimension_numbers<[1], [0], [0], [1], [0, 0, 1, 1], [], []>} : vector<8x32xf32>, vector<32x96xf32>, vector<8x96xf32> -> vector<8x96xf32>
    %275 = arith.addf %274, %5 : vector<8x96xf32>
    %276 = vector.extract_strided_slice %273 {offsets = [0, 0], sizes = [8, 64], strides = [1, 1]} : vector<8x96xf32> to vector<8x64xf32>
    %277 = vector.extract_strided_slice %275 {offsets = [0, 0], sizes = [8, 64], strides = [1, 1]} : vector<8x96xf32> to vector<8x64xf32>
    %278 = arith.addf %276, %277 : vector<8x64xf32>
    %cst_66 = arith.constant 5.000000e-01 : f32
    %279 = vector.broadcast %cst_66 : f32 to vector<8x64xf32>
    %280 = arith.mulf %279, %278 : vector<8x64xf32>
    %281 = math.tanh %280 : vector<8x64xf32>
    %cst_67 = arith.constant 5.000000e-01 : f32
    %282 = vector.broadcast %cst_67 : f32 to vector<8x64xf32>
    %283 = arith.mulf %282, %281 : vector<8x64xf32>
    %cst_68 = arith.constant 5.000000e-01 : f32
    %284 = vector.broadcast %cst_68 : f32 to vector<8x64xf32>
    %285 = arith.addf %283, %284 : vector<8x64xf32>
    %286 = vector.extract_strided_slice %285 {offsets = [0, 0], sizes = [8, 32], strides = [1, 1]} : vector<8x64xf32> to vector<8x32xf32>
    %287 = vector.extract_strided_slice %285 {offsets = [0, 32], sizes = [8, 32], strides = [1, 1]} : vector<8x64xf32> to vector<8x32xf32>
    %288 = vector.extract_strided_slice %273 {offsets = [0, 64], sizes = [8, 32], strides = [1, 1]} : vector<8x96xf32> to vector<8x32xf32>
    %289 = vector.extract_strided_slice %275 {offsets = [0, 64], sizes = [8, 32], strides = [1, 1]} : vector<8x96xf32> to vector<8x32xf32>
    %290 = arith.mulf %286, %289 : vector<8x32xf32>
    %291 = arith.addf %288, %290 : vector<8x32xf32>
    %292 = math.tanh %291 : vector<8x32xf32>
    %293 = arith.subf %248, %292 : vector<8x32xf32>
    %294 = arith.mulf %287, %293 : vector<8x32xf32>
    %295 = arith.addf %292, %294 : vector<8x32xf32>
    %cst_69 = arith.constant dense<0.000000e+00> : vector<8x96xf32>
    %296 = tpu.matmul %248, %1, %cst_69 {dimension_numbers = #tpu.dot_dimension_numbers<[1], [0], [0], [1], [0, 0, 1, 1], [], []>} : vector<8x32xf32>, vector<32x96xf32>, vector<8x96xf32> -> vector<8x96xf32>
    %297 = arith.addf %296, %8 : vector<8x96xf32>
    %cst_70 = arith.constant dense<0.000000e+00> : vector<8x96xf32>
    %298 = tpu.matmul %272, %2, %cst_70 {dimension_numbers = #tpu.dot_dimension_numbers<[1], [0], [0], [1], [0, 0, 1, 1], [], []>} : vector<8x32xf32>, vector<32x96xf32>, vector<8x96xf32> -> vector<8x96xf32>
    %299 = arith.addf %298, %11 : vector<8x96xf32>
    %300 = vector.extract_strided_slice %297 {offsets = [0, 0], sizes = [8, 64], strides = [1, 1]} : vector<8x96xf32> to vector<8x64xf32>
    %301 = vector.extract_strided_slice %299 {offsets = [0, 0], sizes = [8, 64], strides = [1, 1]} : vector<8x96xf32> to vector<8x64xf32>
    %302 = arith.addf %300, %301 : vector<8x64xf32>
    %cst_71 = arith.constant 5.000000e-01 : f32
    %303 = vector.broadcast %cst_71 : f32 to vector<8x64xf32>
    %304 = arith.mulf %303, %302 : vector<8x64xf32>
    %305 = math.tanh %304 : vector<8x64xf32>
    %cst_72 = arith.constant 5.000000e-01 : f32
    %306 = vector.broadcast %cst_72 : f32 to vector<8x64xf32>
    %307 = arith.mulf %306, %305 : vector<8x64xf32>
    %cst_73 = arith.constant 5.000000e-01 : f32
    %308 = vector.broadcast %cst_73 : f32 to vector<8x64xf32>
    %309 = arith.addf %307, %308 : vector<8x64xf32>
    %310 = vector.extract_strided_slice %309 {offsets = [0, 0], sizes = [8, 32], strides = [1, 1]} : vector<8x64xf32> to vector<8x32xf32>
    %311 = vector.extract_strided_slice %309 {offsets = [0, 32], sizes = [8, 32], strides = [1, 1]} : vector<8x64xf32> to vector<8x32xf32>
    %312 = vector.extract_strided_slice %297 {offsets = [0, 64], sizes = [8, 32], strides = [1, 1]} : vector<8x96xf32> to vector<8x32xf32>
    %313 = vector.extract_strided_slice %299 {offsets = [0, 64], sizes = [8, 32], strides = [1, 1]} : vector<8x96xf32> to vector<8x32xf32>
    %314 = arith.mulf %310, %313 : vector<8x32xf32>
    %315 = arith.addf %312, %314 : vector<8x32xf32>
    %316 = math.tanh %315 : vector<8x32xf32>
    %317 = arith.subf %272, %316 : vector<8x32xf32>
    %318 = arith.mulf %311, %317 : vector<8x32xf32>
    %319 = arith.addf %316, %318 : vector<8x32xf32>
    %320 = vector.extract_strided_slice %17 {offsets = [56, 0], sizes = [8, 96], strides = [1, 1]} : vector<64x96xf32> to vector<8x96xf32>
    %cst_74 = arith.constant dense<0.000000e+00> : vector<8x96xf32>
    %321 = tpu.matmul %295, %0, %cst_74 {dimension_numbers = #tpu.dot_dimension_numbers<[1], [0], [0], [1], [0, 0, 1, 1], [], []>} : vector<8x32xf32>, vector<32x96xf32>, vector<8x96xf32> -> vector<8x96xf32>
    %322 = arith.addf %321, %5 : vector<8x96xf32>
    %323 = vector.extract_strided_slice %320 {offsets = [0, 0], sizes = [8, 64], strides = [1, 1]} : vector<8x96xf32> to vector<8x64xf32>
    %324 = vector.extract_strided_slice %322 {offsets = [0, 0], sizes = [8, 64], strides = [1, 1]} : vector<8x96xf32> to vector<8x64xf32>
    %325 = arith.addf %323, %324 : vector<8x64xf32>
    %cst_75 = arith.constant 5.000000e-01 : f32
    %326 = vector.broadcast %cst_75 : f32 to vector<8x64xf32>
    %327 = arith.mulf %326, %325 : vector<8x64xf32>
    %328 = math.tanh %327 : vector<8x64xf32>
    %cst_76 = arith.constant 5.000000e-01 : f32
    %329 = vector.broadcast %cst_76 : f32 to vector<8x64xf32>
    %330 = arith.mulf %329, %328 : vector<8x64xf32>
    %cst_77 = arith.constant 5.000000e-01 : f32
    %331 = vector.broadcast %cst_77 : f32 to vector<8x64xf32>
    %332 = arith.addf %330, %331 : vector<8x64xf32>
    %333 = vector.extract_strided_slice %332 {offsets = [0, 0], sizes = [8, 32], strides = [1, 1]} : vector<8x64xf32> to vector<8x32xf32>
    %334 = vector.extract_strided_slice %332 {offsets = [0, 32], sizes = [8, 32], strides = [1, 1]} : vector<8x64xf32> to vector<8x32xf32>
    %335 = vector.extract_strided_slice %320 {offsets = [0, 64], sizes = [8, 32], strides = [1, 1]} : vector<8x96xf32> to vector<8x32xf32>
    %336 = vector.extract_strided_slice %322 {offsets = [0, 64], sizes = [8, 32], strides = [1, 1]} : vector<8x96xf32> to vector<8x32xf32>
    %337 = arith.mulf %333, %336 : vector<8x32xf32>
    %338 = arith.addf %335, %337 : vector<8x32xf32>
    %339 = math.tanh %338 : vector<8x32xf32>
    %340 = arith.subf %295, %339 : vector<8x32xf32>
    %341 = arith.mulf %334, %340 : vector<8x32xf32>
    %342 = arith.addf %339, %341 : vector<8x32xf32>
    %cst_78 = arith.constant dense<0.000000e+00> : vector<8x96xf32>
    %343 = tpu.matmul %295, %1, %cst_78 {dimension_numbers = #tpu.dot_dimension_numbers<[1], [0], [0], [1], [0, 0, 1, 1], [], []>} : vector<8x32xf32>, vector<32x96xf32>, vector<8x96xf32> -> vector<8x96xf32>
    %344 = arith.addf %343, %8 : vector<8x96xf32>
    %cst_79 = arith.constant dense<0.000000e+00> : vector<8x96xf32>
    %345 = tpu.matmul %319, %2, %cst_79 {dimension_numbers = #tpu.dot_dimension_numbers<[1], [0], [0], [1], [0, 0, 1, 1], [], []>} : vector<8x32xf32>, vector<32x96xf32>, vector<8x96xf32> -> vector<8x96xf32>
    %346 = arith.addf %345, %11 : vector<8x96xf32>
    %347 = vector.extract_strided_slice %344 {offsets = [0, 0], sizes = [8, 64], strides = [1, 1]} : vector<8x96xf32> to vector<8x64xf32>
    %348 = vector.extract_strided_slice %346 {offsets = [0, 0], sizes = [8, 64], strides = [1, 1]} : vector<8x96xf32> to vector<8x64xf32>
    %349 = arith.addf %347, %348 : vector<8x64xf32>
    %cst_80 = arith.constant 5.000000e-01 : f32
    %350 = vector.broadcast %cst_80 : f32 to vector<8x64xf32>
    %351 = arith.mulf %350, %349 : vector<8x64xf32>
    %352 = math.tanh %351 : vector<8x64xf32>
    %cst_81 = arith.constant 5.000000e-01 : f32
    %353 = vector.broadcast %cst_81 : f32 to vector<8x64xf32>
    %354 = arith.mulf %353, %352 : vector<8x64xf32>
    %cst_82 = arith.constant 5.000000e-01 : f32
    %355 = vector.broadcast %cst_82 : f32 to vector<8x64xf32>
    %356 = arith.addf %354, %355 : vector<8x64xf32>
    %357 = vector.extract_strided_slice %356 {offsets = [0, 0], sizes = [8, 32], strides = [1, 1]} : vector<8x64xf32> to vector<8x32xf32>
    %358 = vector.extract_strided_slice %356 {offsets = [0, 32], sizes = [8, 32], strides = [1, 1]} : vector<8x64xf32> to vector<8x32xf32>
    %359 = vector.extract_strided_slice %344 {offsets = [0, 64], sizes = [8, 32], strides = [1, 1]} : vector<8x96xf32> to vector<8x32xf32>
    %360 = vector.extract_strided_slice %346 {offsets = [0, 64], sizes = [8, 32], strides = [1, 1]} : vector<8x96xf32> to vector<8x32xf32>
    %361 = arith.mulf %357, %360 : vector<8x32xf32>
    %362 = arith.addf %359, %361 : vector<8x32xf32>
    %363 = math.tanh %362 : vector<8x32xf32>
    %364 = arith.subf %319, %363 : vector<8x32xf32>
    %365 = arith.mulf %358, %364 : vector<8x32xf32>
    %366 = arith.addf %363, %365 : vector<8x32xf32>
    %cst_83 = arith.constant dense<0.000000e+00> : vector<8x96xf32>
    %367 = tpu.matmul %342, %1, %cst_83 {dimension_numbers = #tpu.dot_dimension_numbers<[1], [0], [0], [1], [0, 0, 1, 1], [], []>} : vector<8x32xf32>, vector<32x96xf32>, vector<8x96xf32> -> vector<8x96xf32>
    %368 = arith.addf %367, %8 : vector<8x96xf32>
    %cst_84 = arith.constant dense<0.000000e+00> : vector<8x96xf32>
    %369 = tpu.matmul %366, %2, %cst_84 {dimension_numbers = #tpu.dot_dimension_numbers<[1], [0], [0], [1], [0, 0, 1, 1], [], []>} : vector<8x32xf32>, vector<32x96xf32>, vector<8x96xf32> -> vector<8x96xf32>
    %370 = arith.addf %369, %11 : vector<8x96xf32>
    %371 = vector.extract_strided_slice %368 {offsets = [0, 0], sizes = [8, 64], strides = [1, 1]} : vector<8x96xf32> to vector<8x64xf32>
    %372 = vector.extract_strided_slice %370 {offsets = [0, 0], sizes = [8, 64], strides = [1, 1]} : vector<8x96xf32> to vector<8x64xf32>
    %373 = arith.addf %371, %372 : vector<8x64xf32>
    %cst_85 = arith.constant 5.000000e-01 : f32
    %374 = vector.broadcast %cst_85 : f32 to vector<8x64xf32>
    %375 = arith.mulf %374, %373 : vector<8x64xf32>
    %376 = math.tanh %375 : vector<8x64xf32>
    %cst_86 = arith.constant 5.000000e-01 : f32
    %377 = vector.broadcast %cst_86 : f32 to vector<8x64xf32>
    %378 = arith.mulf %377, %376 : vector<8x64xf32>
    %cst_87 = arith.constant 5.000000e-01 : f32
    %379 = vector.broadcast %cst_87 : f32 to vector<8x64xf32>
    %380 = arith.addf %378, %379 : vector<8x64xf32>
    %381 = vector.extract_strided_slice %380 {offsets = [0, 0], sizes = [8, 32], strides = [1, 1]} : vector<8x64xf32> to vector<8x32xf32>
    %382 = vector.extract_strided_slice %380 {offsets = [0, 32], sizes = [8, 32], strides = [1, 1]} : vector<8x64xf32> to vector<8x32xf32>
    %383 = vector.extract_strided_slice %368 {offsets = [0, 64], sizes = [8, 32], strides = [1, 1]} : vector<8x96xf32> to vector<8x32xf32>
    %384 = vector.extract_strided_slice %370 {offsets = [0, 64], sizes = [8, 32], strides = [1, 1]} : vector<8x96xf32> to vector<8x32xf32>
    %385 = arith.mulf %381, %384 : vector<8x32xf32>
    %386 = arith.addf %383, %385 : vector<8x32xf32>
    %387 = math.tanh %386 : vector<8x32xf32>
    %388 = arith.subf %366, %387 : vector<8x32xf32>
    %389 = arith.mulf %382, %388 : vector<8x32xf32>
    %390 = arith.addf %387, %389 : vector<8x32xf32>
    %391 = tpu.concatenate %84, %131, %178, %225, %272, %319, %366, %390 in 1 : vector<8x32xf32>, vector<8x32xf32>, vector<8x32xf32>, vector<8x32xf32>, vector<8x32xf32>, vector<8x32xf32>, vector<8x32xf32>, vector<8x32xf32> -> vector<8x256xf32>
    %c0_88 = arith.constant 0 : index
    %c0_89 = arith.constant 0 : index
    %392 = vector.load %arg9[%c0_88, %c0_89] : memref<256x10xf32, #tpu.memory_space<vmem>>, vector<256x10xf32>
    %cst_90 = arith.constant dense<0.000000e+00> : vector<8x10xf32>
    %393 = tpu.matmul %391, %392, %cst_90 {dimension_numbers = #tpu.dot_dimension_numbers<[1], [0], [0], [1], [0, 0, 1, 1], [], []>} : vector<8x256xf32>, vector<256x10xf32>, vector<8x10xf32> -> vector<8x10xf32>
    %c0_91 = arith.constant 0 : index
    %c0_92 = arith.constant 0 : index
    %394 = vector.load %arg10[%c0_91, %c0_92] : memref<1x10xf32, #tpu.memory_space<vmem>>, vector<1x10xf32>
    %395 = vector.broadcast %394 : vector<1x10xf32> to vector<8x10xf32>
    %396 = arith.addf %393, %395 : vector<8x10xf32>
    %c0_93 = arith.constant 0 : index
    %c0_94 = arith.constant 0 : index
    %397 = vector.load %arg11[%c0_93, %c0_94] : memref<8x10xf32, #tpu.memory_space<vmem>>, vector<8x10xf32>
    tpu.vector_store %arg11[%c0_93, %c0_94], %396 {strides = array<i32>} : memref<8x10xf32, #tpu.memory_space<vmem>>, vector<8x10xf32>,
    return
  }
}

</mosaic_0001>

<bundles_post_ra>
// kernel: rnn_gru_forward.1
= control target key start
LH: loop header
LB: loop body
LE: loop exit
PB: predicated region body
PF: predicated region fallthrough
CT: control target
= control target key end

     0   :  { %vm88_vm0 = vcmask 130048   ;;  %s3101_s25 = smov 64   ;;  %s3102_s29 = smov 96   ;;  %v3103_v24 = vmov 0.0|0.0   ;;  %vm3104_vm1 = vmmov 0   ;;  %v3105_v31 = vmov 0.0   ;;  %s3746_s1 = inlined_call_operand.vmem [shape: f32[16,96], index: 1, kind: input, shape index: {}]   ;;  %s3747_s0 = inlined_call_operand.vmem [shape: f32[64,16], index: 0, kind: input, shape index: {}]   ;;  %s3748_s4 = inlined_call_operand.vmem [shape: f32[1,96], index: 4, kind: input, shape index: {}]   ;;  %s3749_s3 = inlined_call_operand.vmem [shape: f32[1,96], index: 3, kind: input, shape index: {}]   ;;  %s3750_s2 = inlined_call_operand.vmem [shape: f32[32,96], index: 2, kind: input, shape index: {}]   ;;  %s3751_s8 = inlined_call_operand.vmem [shape: f32[1,96], index: 8, kind: input, shape index: {}]   ;;  %s3752_s5 = inlined_call_operand.vmem [shape: f32[32,96], index: 5, kind: input, shape index: {}]   ;;  %s3753_s7 = inlined_call_operand.vmem [shape: f32[1,96], index: 7, kind: input, shape index: {}]   ;;  %s3754_s6 = inlined_call_operand.vmem [shape: f32[32,96], index: 6, kind: input, shape index: {}]   ;;  %s3755_s9 = inlined_call_operand.vmem [shape: f32[256,10], index: 9, kind: input, shape index: {}]   ;;  %s3756_s10 = inlined_call_operand.vmem [shape: f32[1,10], index: 10, kind: input, shape index: {}]   ;;  %s3757_s11 = inlined_call_operand.vmem [shape: f32[8,10], index: 11, kind: output, shape index: {}]  }
   0x1   :  { %v79_v0 = vld [vmem:[%s3746_s1] sm:$0xff]  ;;  %v80_v1 = vld [vmem:[%s3746_s1 + $0x8] sm:$0xff]  ;;  %v73_v21 = vld [vmem:[%s3747_s0 + $0x10] sm:$0xff]  ;;  %2866 = vmatprep.subr.bf16.mxu0 %v3103_v24  ;;  %2638 = vmatprep.mubr.msk.f32.mxu0 %vm3104_vm1, %v3105_v31  ;;  %s3106_s12 = smov 32   ;;  %vm247_vm2 = vcmask 261120   ;;  %vm2280_vm3 = vcmask 523264  }
   0x2   :  { %v71_v2 = vld [vmem:[%s3747_s0] sm:$0xff]  ;;  %v2850_v3 = vpack.c.bf16 %v80_v1, %v79_v0  ;;  %v72_v5 = vld [vmem:[%s3747_s0 + $0x8] sm:$0xff]  ;;  %v74_v22 = vld [vmem:[%s3747_s0 + $0x18] sm:$0xff]  ;;  %vm2282_vm4 = vcmask 785408   ;;  %vm2396_vm5 = vcmask 80896  }
   0x3   :  { %2596 = vmatprep.mubr.msk.f32.mxu1 %vm88_vm0, %v71_v2  ;;  %v3180_v4 = vld [vmem:[%s3748_s4] ss:$0 sm:$0xff]  ;;  %v39_v26 = vld [vmem:[%s3750_s2 + $0x8] sm:$0xff]  ;;  %v40_v28 = vld [vmem:[%s3750_s2 + $0x10] sm:$0xff] }
   0x4   :  { %223 = vrot.lane.b32.xlu0 %v3180_v4, %s3101_s25  ;;  %2851 = vmatprep.subr.bf16.mxu1 %v2850_v3  ;;  %v3191_v6 = vld [vmem:[%s3749_s3] ss:$0 sm:$0xff]  ;;  %v41_v29 = vld [vmem:[%s3750_s2 + $0x18] sm:$0xff]  ;;  %v76_v30 = vld [vmem:[%s3747_s0 + $0x28] sm:$0xff] }
   0x5   :  { %2853 = vmatpush3.bf16.msra.mxu1 %v2850_v3  ;;  %v75_v23 = vld [vmem:[%s3747_s0 + $0x20] sm:$0xff]  ;;  %v3233_v32 = vpack.c.bf16 %v41_v29, %v40_v28  ;;  %v77_v33 = vld [vmem:[%s3747_s0 + $0x30] sm:$0xff]  ;;  %v78_v34 = vld [vmem:[%s3747_s0 + $0x38] sm:$0xff] }
   0x6   :  { %2854 = vmatprep.subr.bf16.mxu1 %v3103_v24  ;;  %v38_v25 = vld [vmem:[%s3750_s2] sm:$0xff]  ;;  %v43_v47 = vld [vmem:[%s3752_s5 + $0x8] sm:$0xff]  ;;  %v44_v49 = vld [vmem:[%s3752_s5 + $0x10] sm:$0xff] }
   0x7   :  { %v3216_v27 = vpack.c.bf16 %v39_v26, %v38_v25  ;;  %v3261_v39 = vld [vmem:[%s3751_s8] ss:$0 sm:$0xff]  ;;  %v45_v50 = vld [vmem:[%s3752_s5 + $0x18] sm:$0xff] }
   0x8   :  { %2597 = vmatmul.mubr.msk.f32.vlgmr.msra.gmra.mrb[0].mxu1 %vm88_vm0, %v72_v5  ;;  %v42_v46 = vld [vmem:[%s3752_s5] sm:$0xff]  ;;  %v3293_v52 = vpack.c.bf16 %v45_v50, %v44_v49 }
   0x9   :  { %2599 = vmatprep.mubr.msk.f32.mxu1 %vm88_vm0, %v73_v21  ;;  %2856 = vmatpush3.bf16.msra.mxu1 %v3216_v27  ;;  %v3283_v48 = vpack.c.bf16 %v43_v47, %v42_v46  ;;  %v3312_v56 = vld [vmem:[%s3753_s7] ss:$0 sm:$0xff] }
   0xa   :  { %2868 = vmatpush3.bf16.msra.mxu0 %v3216_v27  ;;  %2857 = vmatprep.subr.bf16.mxu1 %v3103_v24 }
   0xb   :  { %2869 = vmatprep.subr.bf16.mxu0 %v3103_v24 }
   0xc   :  { %2600 = vmatmul.mubr.msk.f32.gmra.mrb[2].mxu1 %vm88_vm0, %v74_v22 }
   0xd   :  { %2602 = vmatprep.mubr.msk.f32.mxu1 %vm88_vm0, %v75_v23  ;;  %2859 = vmatpush3.bf16.msra.mxu1 %v3233_v32 }
   0xe   :  { %2871 = vmatpush3.bf16.msra.mxu0 %v3233_v32  ;;  %2860 = vmatprep.subr.bf16.mxu1 %v3103_v24 }
   0xf   :  { %2878 = vmatprep.subr.bf16.mxu0 %v3103_v24 }
  0x10   :  { %2603 = vmatmul.mubr.msk.f32.gmra.mrb[4].mxu1 %vm88_vm0, %v76_v30 }
  0x11   :  { %2605 = vmatprep.mubr.msk.f32.mxu1 %vm88_vm0, %v77_v33  ;;  %v46_v33 = vld [vmem:[%s3754_s6] sm:$0xff] }
  0x14   :  { %2606 = vmatmul.mubr.msk.f32.gmra.mrb[6].mxu1 %vm88_vm0, %v78_v34  ;;  %v47_v34 = vld [vmem:[%s3754_s6 + $0x8] sm:$0xff] }
  0x15   :  { %2616 = vmatprep.mubr.msk.f32.mxu1 %vm3104_vm1, %v3105_v31 }
  0x76   :  { %v224_v14 = vpop.permute.xlu0 %223 }
  0xdb   :  { %v3193_v7 = vpop.f32.mrb[0].mxu1 }
  0xdc   :  { %v179_v8 = vpop.f32.mrb[1].mxu1  ;;  %v185_v3 = vadd.f32 %v3193_v7, %v3191_v6 }
  0xdd   :  { %v180_v9 = vadd.f32 %v3191_v6, %v179_v8 }
  0xdf   :  { %v218_v10 = vadd.f32 %v3180_v4, %v180_v9  ;;  %v3265_v40 = vpop.f32.mrb[2].mxu1 }
  0xe0   :  { %v3267_v41 = vpop.f32.mrb[3].mxu1 }
  0xe1   :  { %v219_v11 = vmul.f32 0.5, %v218_v10 }
  0xe3   :  { %3034 = vtanh.f32 %v219_v11  ;;  %v3269_v42 = vpop.f32.mrb[4].mxu1 }
  0xe4   :  { %v3271_v43 = vpop.f32.mrb[5].mxu1 }
  0xe7   :  { %v3273_v44 = vpop.f32.mrb[6].mxu1 }
  0xe8   :  { %v3275_v45 = vpop.f32.mrb[7].mxu1 }
  0xed   :  { %v3035_v12 = vpop.eup %3034 }
  0xee   :  { %v221_v13 = vmul.f32 0.5, %v3035_v12 }
  0xf0   :  { %v222_v15 = vadd.f32 0.5, %v221_v13 }
  0xf2   :  { %v226_v16 = vmul.f32 %v224_v14, %v222_v15 }
  0xf4   :  { %228 = vrot.lane.b32.xlu0 %v226_v16, %s3101_s25 }
 0x166   :  { %v229_v17 = vpop.permute.xlu0 %228 }
 0x167   :  { %v231_v18 = vadd.f32 %v229_v17, %v180_v9 }
 0x169   :  { %3036 = vtanh.f32 %v231_v18 }
 0x173   :  { %v3037_v19 = vpop.eup %3036 }
 0x174   :  { %v233_v20 = vsub.f32 0.0, %v3037_v19 }
 0x176   :  { %235 = vrot.lane.b32.xlu1 %v233_v20, %s3102_s29 }
 0x1e8   :  { %v236_v35 = vpop.permute.xlu1 %235 }
 0x1e9   :  { %v238_v36 = vmul.f32 %v236_v35, %v222_v15  ;;  %v3339_v35 = vpack.c.bf16 %v47_v34, %v46_v33 }
 0x1eb   :  { %240 = vrot.lane.b32.xlu1 %v238_v36, %s3106_s12  ;;  %v48_v36 = vld [vmem:[%s3754_s6 + $0x10] sm:$0xff] }
 0x25d   :  { %v241_v37 = vpop.permute.xlu1 %240 }
 0x25e   :  { %v3254_v38 = vadd.f32 %v3037_v19, %v241_v37  ;;  %v49_v37 = vld [vmem:[%s3754_s6 + $0x18] sm:$0xff] }
 0x25f   :  { %v3350_v46 = vpack.c.bf16 %v49_v37, %v48_v36 }
 0x260   :  { %245 = vrot.lane.b32.xlu0 %v3254_v38, %s3101_s25 }
 0x264   :  { %422 = vrot.lane.b32.xlu0 %v3261_v39, %s3101_s25 }
 0x2d2   :  { %v246_v51 = vpop.permute.xlu0 %245 }
 0x2d3   :  { %2617 = vmatmul.mubr.msk.f32.vlgmr.msra.gmra.mrb[8].mxu1 %vm247_vm2, %v246_v51 }
 0x2d4   :  { %2862 = vmatpush3.bf16.msra.mxu1 %v3283_v48  ;;  %2627 = vmatprep.mubr.msk.f32.mxu1 %vm3104_vm1, %v3105_v31 }
 0x2d5   :  { %2863 = vmatprep.subr.bf16.mxu1 %v3103_v24 }
 0x2d6   :  { %v423_v0 = vpop.permute.xlu0 %422 }
 0x2d8   :  { %2865 = vmatpush3.bf16.msra.mxu1 %v3293_v52 }
 0x2d9   :  { %2872 = vmatprep.subr.bf16.mxu1 %v3103_v24 }
 0x2db   :  { %2628 = vmatmul.mubr.msk.f32.vlgmr.msra.gmra.mrb[10].mxu1 %vm247_vm2, %v246_v51 }
 0x2dc   :  { %2874 = vmatpush3.bf16.msra.mxu1 %v3283_v48  ;;  %2649 = vmatprep.mubr.msk.f32.mxu1 %vm3104_vm1, %v3105_v31 }
 0x2dd   :  { %2875 = vmatprep.subr.bf16.mxu1 %v3103_v24 }
 0x2e0   :  { %2877 = vmatpush3.bf16.msra.mxu1 %v3293_v52 }
 0x2e1   :  { %2884 = vmatprep.subr.bf16.mxu1 %v3103_v24 }
 0x3a6   :  { %v316_v53 = vpop.f32.mrb[8].mxu1 }
 0x3a7   :  { %v317_v54 = vadd.f32 %v3180_v4, %v316_v53  ;;  %v2618_v55 = vpop.f32.mrb[9].mxu1 }
 0x3a9   :  { %326 = vrot.lane.b32.xlu1 %v317_v54, %s3101_s25  ;;  %v320_v5 = vadd.f32 %v317_v54, %v185_v3 }
 0x3ab   :  { %v321_v8 = vmul.f32 0.5, %v320_v5 }
 0x3ae   :  { %v413_v57 = vpop.f32.mrb[10].mxu1 }
 0x3af   :  { %v414_v58 = vadd.f32 %v3312_v56, %v413_v57  ;;  %v2629_v59 = vpop.f32.mrb[11].mxu1 }
 0x3b0   :  { %v190_v59 = vadd.f32 %v3191_v6, %v3267_v41 }
 0x3b1   :  { %v417_v60 = vadd.f32 %v3261_v39, %v414_v58 }
 0x3b3   :  { %v418_v61 = vmul.f32 0.5, %v417_v60 }
 0x3b5   :  { %3038 = vtanh.f32 %v418_v61 }
 0x3b6   :  { %3040 = vtanh.f32 %v321_v8 }
 0x3bf   :  { %v3039_v62 = vpop.eup %3038 }
 0x3c0   :  { %v420_v63 = vmul.f32 0.5, %v3039_v62  ;;  %v3041_v9 = vpop.eup %3040 }
 0x3c1   :  { %v323_v10 = vmul.f32 0.5, %v3041_v9 }
 0x3c2   :  { %v421_v1 = vadd.f32 0.5, %v420_v63 }
 0x3c3   :  { %v324_v11 = vadd.f32 0.5, %v323_v10 }
 0x3c4   :  { %v425_v2 = vmul.f32 %v423_v0, %v421_v1 }
 0x3c6   :  { %427 = vrot.lane.b32.xlu0 %v425_v2, %s3101_s25 }
 0x41b   :  { %v327_v12 = vpop.permute.xlu1 %326 }
 0x41c   :  { %v329_v13 = vmul.f32 %v327_v12, %v324_v11 }
 0x41e   :  { %331 = vrot.lane.b32.xlu1 %v329_v13, %s3101_s25 }
 0x438   :  { %v428_v14 = vpop.permute.xlu0 %427 }
 0x439   :  { %v430_v15 = vadd.f32 %v428_v14, %v414_v58 }
 0x43b   :  { %3042 = vtanh.f32 %v430_v15 }
 0x445   :  { %v3043_v16 = vpop.eup %3042 }
 0x446   :  { %v432_v17 = vsub.f32 0.0, %v3043_v16 }
 0x448   :  { %434 = vrot.lane.b32.xlu0 %v432_v17, %s3102_s29 }
 0x490   :  { %v332_v18 = vpop.permute.xlu1 %331 }
 0x491   :  { %v334_v19 = vadd.f32 %v332_v18, %v185_v3 }
 0x493   :  { %3044 = vtanh.f32 %v334_v19 }
 0x49d   :  { %v3045_v7 = vpop.eup %3044 }
 0x49e   :  { %v336_v20 = vsub.f32 %v3254_v38, %v3045_v7 }
 0x4a0   :  { %338 = vrot.lane.b32.xlu1 %v336_v20, %s3102_s29 }
 0x4ba   :  { %v435_v21 = vpop.permute.xlu0 %434 }
 0x4bb   :  { %v437_v22 = vmul.f32 %v435_v21, %v421_v1 }
 0x4bd   :  { %439 = vrot.lane.b32.xlu0 %v437_v22, %s3106_s12 }
 0x512   :  { %v339_v23 = vpop.permute.xlu1 %338 }
 0x513   :  { %v341_v25 = vmul.f32 %v339_v23, %v324_v11 }
 0x515   :  { %343 = vrot.lane.b32.xlu1 %v341_v25, %s3106_s12 }
 0x52f   :  { %v440_v26 = vpop.permute.xlu0 %439 }
 0x530   :  { %v3325_v28 = vadd.f32 %v3043_v16, %v440_v26 }
 0x532   :  { %616 = vrot.lane.b32.xlu0 %v3325_v28, %s3101_s25 }
 0x587   :  { %v344_v29 = vpop.permute.xlu1 %343 }
 0x588   :  { %v3329_v30 = vadd.f32 %v3045_v7, %v344_v29 }
 0x58a   :  { %444 = vrot.lane.b32.xlu1 %v3329_v30, %s3101_s25 }
 0x5a4   :  { %v3362_v47 = vpop.permute.xlu0 %616 }
 0x5fc   :  { %v445_v38 = vpop.permute.xlu1 %444 }
 0x5fd   :  { %2639 = vmatmul.mubr.msk.f32.vlgmr.msra.gmra.mrb[0].mxu0 %vm247_vm2, %v445_v38  ;;  %2650 = vmatmul.mubr.msk.f32.vlgmr.msra.gmra.mrb[12].mxu1 %vm247_vm2, %v445_v38 }
 0x5fe   :  { %2880 = vmatpush3.bf16.msra.mxu0 %v3339_v35  ;;  %2660 = vmatprep.mubr.msk.f32.mxu0 %vm3104_vm1, %v3105_v31 }
 0x5ff   :  { %2881 = vmatprep.subr.bf16.mxu0 %v3103_v24  ;;  %2886 = vmatpush3.bf16.msra.mxu1 %v3216_v27 }
 0x600   :  { %2887 = vmatprep.subr.bf16.mxu1 %v3103_v24  ;;  %2671 = vmatprep.mubr.msk.f32.mxu1 %vm3104_vm1, %v3105_v31 }
 0x602   :  { %2883 = vmatpush3.bf16.msra.mxu0 %v3350_v46 }
 0x603   :  { %2890 = vmatprep.subr.bf16.mxu0 %v3103_v24  ;;  %2889 = vmatpush3.bf16.msra.mxu1 %v3233_v32 }
 0x604   :  { %2896 = vmatprep.subr.bf16.mxu1 %v3103_v24 }
 0x605   :  { %2661 = vmatmul.mubr.msk.f32.vlgmr.msra.gmra.mrb[2].mxu0 %vm247_vm2, %v3362_v47 }
 0x606   :  { %2892 = vmatpush3.bf16.msra.mxu0 %v3283_v48  ;;  %2682 = vmatprep.mubr.msk.f32.mxu0 %vm3104_vm1, %v3105_v31 }
 0x607   :  { %2893 = vmatprep.subr.bf16.mxu0 %v3103_v24 }
 0x60a   :  { %2895 = vmatpush3.bf16.msra.mxu0 %v3293_v52 }
 0x60b   :  { %2902 = vmatprep.subr.bf16.mxu0 %v3103_v24 }
 0x6d0   :  { %v514_v49 = vpop.f32.mrb[0].mxu0  ;;  %v611_v50 = vpop.f32.mrb[12].mxu1 }
 0x6d1   :  { %v515_v51 = vadd.f32 %v3180_v4, %v514_v49  ;;  %v2640_v53 = vpop.f32.mrb[1].mxu0  ;;  %v2651_v54 = vpop.f32.mrb[13].mxu1  ;;  %v612_v62 = vadd.f32 %v3312_v56, %v611_v50 }
 0x6d2   :  { %v195_v54 = vadd.f32 %v3265_v40, %v3191_v6 }
 0x6d3   :  { %524 = vrot.lane.b32.xlu1 %v515_v51, %s3101_s25  ;;  %v518_v60 = vadd.f32 %v515_v51, %v190_v59 }
 0x6d5   :  { %v519_v61 = vmul.f32 0.5, %v518_v60 }
 0x6d7   :  { %3046 = vtanh.f32 %v519_v61 }
 0x6d8   :  { %v686_v55 = vpop.f32.mrb[2].mxu0 }
 0x6d9   :  { %v687_v57 = vadd.f32 %v3261_v39, %v686_v55  ;;  %v2662_v58 = vpop.f32.mrb[3].mxu0 }
 0x6db   :  { %696 = vrot.lane.b32.xlu0 %v687_v57, %s3101_s25  ;;  %v690_v63 = vadd.f32 %v687_v57, %v612_v62 }
 0x6dd   :  { %v691_v0 = vmul.f32 0.5, %v690_v63 }
 0x6df   :  { %3048 = vtanh.f32 %v691_v0 }
 0x6e1   :  { %v3047_v1 = vpop.eup %3046 }
 0x6e2   :  { %v521_v2 = vmul.f32 0.5, %v3047_v1 }
 0x6e4   :  { %v522_v3 = vadd.f32 0.5, %v521_v2 }
 0x6e9   :  { %v3049_v5 = vpop.eup %3048 }
 0x6ea   :  { %v693_v10 = vmul.f32 0.5, %v3049_v5 }
 0x6ec   :  { %v694_v11 = vadd.f32 0.5, %v693_v10 }
 0x745   :  { %v525_v8 = vpop.permute.xlu1 %524 }
 0x746   :  { %v527_v9 = vmul.f32 %v525_v8, %v522_v3 }
 0x748   :  { %529 = vrot.lane.b32.xlu1 %v527_v9, %s3101_s25 }
 0x74d   :  { %v697_v12 = vpop.permute.xlu0 %696 }
 0x74e   :  { %v699_v41 = vmul.f32 %v697_v12, %v694_v11 }
 0x750   :  { %701 = vrot.lane.b32.xlu0 %v699_v41, %s3101_s25 }
 0x7ba   :  { %v530_v13 = vpop.permute.xlu1 %529 }
 0x7bb   :  { %v532_v14 = vadd.f32 %v530_v13, %v190_v59 }
 0x7bd   :  { %3050 = vtanh.f32 %v532_v14 }
 0x7c2   :  { %v702_v15 = vpop.permute.xlu0 %701 }
 0x7c3   :  { %v704_v16 = vadd.f32 %v702_v15, %v612_v62 }
 0x7c5   :  { %3052 = vtanh.f32 %v704_v16 }
 0x7c7   :  { %v3051_v17 = vpop.eup %3050 }
 0x7c8   :  { %v534_v18 = vsub.f32 %v3329_v30, %v3051_v17 }
 0x7ca   :  { %536 = vrot.lane.b32.xlu1 %v534_v18, %s3102_s29 }
 0x7cf   :  { %v3053_v19 = vpop.eup %3052 }
 0x7d0   :  { %v706_v7 = vsub.f32 %v3325_v28, %v3053_v19 }
 0x7d2   :  { %708 = vrot.lane.b32.xlu0 %v706_v7, %s3102_s29 }
 0x83c   :  { %v537_v20 = vpop.permute.xlu1 %536 }
 0x83d   :  { %v539_v21 = vmul.f32 %v537_v20, %v522_v3 }
 0x83f   :  { %541 = vrot.lane.b32.xlu1 %v539_v21, %s3106_s12 }
 0x844   :  { %v709_v22 = vpop.permute.xlu0 %708 }
 0x845   :  { %v711_v23 = vmul.f32 %v709_v22, %v694_v11 }
 0x847   :  { %713 = vrot.lane.b32.xlu0 %v711_v23, %s3106_s12 }
 0x8b1   :  { %v542_v25 = vpop.permute.xlu1 %541 }
 0x8b2   :  { %v3388_v26 = vadd.f32 %v3051_v17, %v542_v25 }
 0x8b4   :  { %718 = vrot.lane.b32.xlu1 %v3388_v26, %s3101_s25 }
 0x8b9   :  { %v714_v29 = vpop.permute.xlu0 %713 }
 0x8ba   :  { %v3392_v30 = vadd.f32 %v3053_v19, %v714_v29 }
 0x8bc   :  { %890 = vrot.lane.b32.xlu0 %v3392_v30, %s3101_s25 }
 0x926   :  { %v719_v28 = vpop.permute.xlu1 %718 }
 0x927   :  { %2672 = vmatmul.mubr.msk.f32.vlgmr.msra.gmra.mrb[14].mxu1 %vm247_vm2, %v719_v28  ;;  %2683 = vmatmul.mubr.msk.f32.vlgmr.msra.gmra.mrb[4].mxu0 %vm247_vm2, %v719_v28 }
 0x928   :  { %2898 = vmatpush3.bf16.msra.mxu1 %v3339_v35  ;;  %2693 = vmatprep.mubr.msk.f32.mxu1 %vm3104_vm1, %v3105_v31 }
 0x929   :  { %2899 = vmatprep.subr.bf16.mxu1 %v3103_v24  ;;  %2904 = vmatpush3.bf16.msra.mxu0 %v3216_v27 }
 0x92a   :  { %2905 = vmatprep.subr.bf16.mxu0 %v3103_v24  ;;  %2704 = vmatprep.mubr.msk.f32.mxu0 %vm3104_vm1, %v3105_v31 }
 0x92c   :  { %2901 = vmatpush3.bf16.msra.mxu1 %v3350_v46 }
 0x92d   :  { %2908 = vmatprep.subr.bf16.mxu1 %v3103_v24  ;;  %2907 = vmatpush3.bf16.msra.mxu0 %v3233_v32 }
 0x92e   :  { %v891_v33 = vpop.permute.xlu0 %890  ;;  %2914 = vmatprep.subr.bf16.mxu0 %v3103_v24 }
 0x92f   :  { %2694 = vmatmul.mubr.msk.f32.vlgmr.msra.gmra.mrb[16].mxu1 %vm247_vm2, %v891_v33 }
 0x930   :  { %2910 = vmatpush3.bf16.msra.mxu1 %v3283_v48  ;;  %2715 = vmatprep.mubr.msk.f32.mxu1 %vm3104_vm1, %v3105_v31 }
 0x931   :  { %2911 = vmatprep.subr.bf16.mxu1 %v3103_v24 }
 0x934   :  { %2913 = vmatpush3.bf16.msra.mxu1 %v3293_v52 }
 0x935   :  { %2920 = vmatprep.subr.bf16.mxu1 %v3103_v24 }
 0x9fa   :  { %v788_v34 = vpop.f32.mrb[14].mxu1  ;;  %v885_v36 = vpop.f32.mrb[4].mxu0 }
 0x9fb   :  { %v789_v37 = vadd.f32 %v3180_v4, %v788_v34  ;;  %v2673_v38 = vpop.f32.mrb[15].mxu1  ;;  %v2684_v49 = vpop.f32.mrb[5].mxu0  ;;  %v886_v58 = vadd.f32 %v3312_v56, %v885_v36 }
 0x9fc   :  { %v200_v49 = vadd.f32 %v3191_v6, %v3271_v43 }
 0x9fd   :  { %798 = vrot.lane.b32.xlu1 %v789_v37, %s3101_s25  ;;  %v792_v55 = vadd.f32 %v789_v37, %v195_v54 }
 0x9ff   :  { %v793_v57 = vmul.f32 0.5, %v792_v55 }
 0xa01   :  { %3054 = vtanh.f32 %v793_v57 }
 0xa02   :  { %v960_v50 = vpop.f32.mrb[16].mxu1 }
 0xa03   :  { %v961_v51 = vadd.f32 %v3261_v39, %v960_v50  ;;  %v2695_v53 = vpop.f32.mrb[17].mxu1 }
 0xa05   :  { %970 = vrot.lane.b32.xlu0 %v961_v51, %s3101_s25  ;;  %v964_v59 = vadd.f32 %v961_v51, %v886_v58 }
 0xa07   :  { %v965_v60 = vmul.f32 0.5, %v964_v59 }
 0xa09   :  { %3056 = vtanh.f32 %v965_v60 }
 0xa0b   :  { %v3055_v61 = vpop.eup %3054 }
 0xa0c   :  { %v795_v62 = vmul.f32 0.5, %v3055_v61 }
 0xa0e   :  { %v796_v63 = vadd.f32 0.5, %v795_v62 }
 0xa13   :  { %v3057_v0 = vpop.eup %3056 }
 0xa14   :  { %v967_v3 = vmul.f32 0.5, %v3057_v0 }
 0xa16   :  { %v968_v5 = vadd.f32 0.5, %v967_v3 }
 0xa6f   :  { %v799_v1 = vpop.permute.xlu1 %798 }
 0xa70   :  { %v801_v2 = vmul.f32 %v799_v1, %v796_v63 }
 0xa72   :  { %803 = vrot.lane.b32.xlu1 %v801_v2, %s3101_s25 }
 0xa77   :  { %v971_v8 = vpop.permute.xlu0 %970 }
 0xa78   :  { %v973_v40 = vmul.f32 %v971_v8, %v968_v5 }
 0xa7a   :  { %975 = vrot.lane.b32.xlu0 %v973_v40, %s3101_s25 }
 0xae4   :  { %v804_v9 = vpop.permute.xlu1 %803 }
 0xae5   :  { %v806_v10 = vadd.f32 %v804_v9, %v195_v54 }
 0xae7   :  { %3058 = vtanh.f32 %v806_v10 }
 0xaec   :  { %v976_v11 = vpop.permute.xlu0 %975 }
 0xaed   :  { %v978_v12 = vadd.f32 %v976_v11, %v886_v58 }
 0xaef   :  { %3060 = vtanh.f32 %v978_v12 }
 0xaf1   :  { %v3059_v41 = vpop.eup %3058 }
 0xaf2   :  { %v808_v13 = vsub.f32 %v3388_v26, %v3059_v41 }
 0xaf4   :  { %810 = vrot.lane.b32.xlu1 %v808_v13, %s3102_s29 }
 0xaf9   :  { %v3061_v14 = vpop.eup %3060 }
 0xafa   :  { %v980_v15 = vsub.f32 %v3392_v30, %v3061_v14 }
 0xafc   :  { %982 = vrot.lane.b32.xlu0 %v980_v15, %s3102_s29 }
 0xb66   :  { %v811_v16 = vpop.permute.xlu1 %810 }
 0xb67   :  { %v813_v17 = vmul.f32 %v811_v16, %v796_v63 }
 0xb69   :  { %815 = vrot.lane.b32.xlu1 %v813_v17, %s3106_s12 }
 0xb6e   :  { %v983_v18 = vpop.permute.xlu0 %982 }
 0xb6f   :  { %v985_v19 = vmul.f32 %v983_v18, %v968_v5 }
 0xb71   :  { %987 = vrot.lane.b32.xlu0 %v985_v19, %s3106_s12 }
 0xbdb   :  { %v816_v7 = vpop.permute.xlu1 %815 }
 0xbdc   :  { %v3432_v20 = vadd.f32 %v3059_v41, %v816_v7 }
 0xbde   :  { %992 = vrot.lane.b32.xlu1 %v3432_v20, %s3101_s25 }
 0xbe3   :  { %v988_v21 = vpop.permute.xlu0 %987 }
 0xbe4   :  { %v3436_v22 = vadd.f32 %v3061_v14, %v988_v21 }
 0xbe6   :  { %1164 = vrot.lane.b32.xlu0 %v3436_v22, %s3101_s25 }
 0xc50   :  { %v993_v23 = vpop.permute.xlu1 %992 }
 0xc51   :  { %2705 = vmatmul.mubr.msk.f32.vlgmr.msra.gmra.mrb[6].mxu0 %vm247_vm2, %v993_v23  ;;  %2716 = vmatmul.mubr.msk.f32.vlgmr.msra.gmra.mrb[18].mxu1 %vm247_vm2, %v993_v23 }
 0xc52   :  { %2916 = vmatpush3.bf16.msra.mxu0 %v3339_v35  ;;  %2726 = vmatprep.mubr.msk.f32.mxu0 %vm3104_vm1, %v3105_v31 }
 0xc53   :  { %2917 = vmatprep.subr.bf16.mxu0 %v3103_v24  ;;  %2922 = vmatpush3.bf16.msra.mxu1 %v3216_v27 }
 0xc54   :  { %2923 = vmatprep.subr.bf16.mxu1 %v3103_v24  ;;  %2737 = vmatprep.mubr.msk.f32.mxu1 %vm3104_vm1, %v3105_v31 }
 0xc56   :  { %2919 = vmatpush3.bf16.msra.mxu0 %v3350_v46 }
 0xc57   :  { %2926 = vmatprep.subr.bf16.mxu0 %v3103_v24  ;;  %2925 = vmatpush3.bf16.msra.mxu1 %v3233_v32 }
 0xc58   :  { %v1165_v25 = vpop.permute.xlu0 %1164  ;;  %2932 = vmatprep.subr.bf16.mxu1 %v3103_v24 }
 0xc59   :  { %2727 = vmatmul.mubr.msk.f32.vlgmr.msra.gmra.mrb[8].mxu0 %vm247_vm2, %v1165_v25 }
 0xc5a   :  { %2928 = vmatpush3.bf16.msra.mxu0 %v3283_v48  ;;  %2748 = vmatprep.mubr.msk.f32.mxu0 %vm3104_vm1, %v3105_v31 }
 0xc5b   :  { %2929 = vmatprep.subr.bf16.mxu0 %v3103_v24 }
 0xc5e   :  { %2931 = vmatpush3.bf16.msra.mxu0 %v3293_v52 }
 0xc5f   :  { %2938 = vmatprep.subr.bf16.mxu0 %v3103_v24 }
 0xd24   :  { %v1062_v26 = vpop.f32.mrb[6].mxu0  ;;  %v1159_v29 = vpop.f32.mrb[18].mxu1 }
 0xd25   :  { %v1063_v28 = vadd.f32 %v3180_v4, %v1062_v26  ;;  %v2706_v33 = vpop.f32.mrb[7].mxu0  ;;  %v2717_v34 = vpop.f32.mrb[19].mxu1  ;;  %v1160_v53 = vadd.f32 %v3312_v56, %v1159_v29 }
 0xd26   :  { %v205_v34 = vadd.f32 %v3269_v42, %v3191_v6 }
 0xd27   :  { %1072 = vrot.lane.b32.xlu1 %v1063_v28, %s3101_s25  ;;  %v1066_v50 = vadd.f32 %v1063_v28, %v200_v49 }
 0xd29   :  { %v1067_v51 = vmul.f32 0.5, %v1066_v50 }
 0xd2b   :  { %3062 = vtanh.f32 %v1067_v51 }
 0xd2c   :  { %v1234_v36 = vpop.f32.mrb[8].mxu0 }
 0xd2d   :  { %v1235_v37 = vadd.f32 %v3261_v39, %v1234_v36  ;;  %v2728_v38 = vpop.f32.mrb[9].mxu0 }
 0xd2f   :  { %1244 = vrot.lane.b32.xlu0 %v1235_v37, %s3101_s25  ;;  %v1238_v54 = vadd.f32 %v1235_v37, %v1160_v53 }
 0xd31   :  { %v1239_v55 = vmul.f32 0.5, %v1238_v54 }
 0xd33   :  { %3064 = vtanh.f32 %v1239_v55 }
 0xd35   :  { %v3063_v57 = vpop.eup %3062 }
 0xd36   :  { %v1069_v58 = vmul.f32 0.5, %v3063_v57 }
 0xd38   :  { %v1070_v59 = vadd.f32 0.5, %v1069_v58 }
 0xd3d   :  { %v3065_v60 = vpop.eup %3064 }
 0xd3e   :  { %v1241_v63 = vmul.f32 0.5, %v3065_v60 }
 0xd40   :  { %v1242_v0 = vadd.f32 0.5, %v1241_v63 }
 0xd99   :  { %v1073_v61 = vpop.permute.xlu1 %1072 }
 0xd9a   :  { %v1075_v62 = vmul.f32 %v1073_v61, %v1070_v59 }
 0xd9c   :  { %1077 = vrot.lane.b32.xlu1 %v1075_v62, %s3101_s25 }
 0xda1   :  { %v1245_v1 = vpop.permute.xlu0 %1244 }
 0xda2   :  { %v1247_v43 = vmul.f32 %v1245_v1, %v1242_v0 }
 0xda4   :  { %1249 = vrot.lane.b32.xlu0 %v1247_v43, %s3101_s25 }
 0xe0e   :  { %v1078_v2 = vpop.permute.xlu1 %1077 }
 0xe0f   :  { %v1080_v3 = vadd.f32 %v1078_v2, %v200_v49 }
 0xe11   :  { %3066 = vtanh.f32 %v1080_v3 }
 0xe16   :  { %v1250_v5 = vpop.permute.xlu0 %1249 }
 0xe17   :  { %v1252_v8 = vadd.f32 %v1250_v5, %v1160_v53 }
 0xe19   :  { %3068 = vtanh.f32 %v1252_v8 }
 0xe1b   :  { %v3067_v40 = vpop.eup %3066 }
 0xe1c   :  { %v1082_v9 = vsub.f32 %v3432_v20, %v3067_v40 }
 0xe1e   :  { %1084 = vrot.lane.b32.xlu1 %v1082_v9, %s3102_s29 }
 0xe23   :  { %v3069_v10 = vpop.eup %3068 }
 0xe24   :  { %v1254_v11 = vsub.f32 %v3436_v22, %v3069_v10 }
 0xe26   :  { %1256 = vrot.lane.b32.xlu0 %v1254_v11, %s3102_s29 }
 0xe90   :  { %v1085_v12 = vpop.permute.xlu1 %1084 }
 0xe91   :  { %v1087_v41 = vmul.f32 %v1085_v12, %v1070_v59 }
 0xe93   :  { %1089 = vrot.lane.b32.xlu1 %v1087_v41, %s3106_s12 }
 0xe98   :  { %v1257_v13 = vpop.permute.xlu0 %1256 }
 0xe99   :  { %v1259_v14 = vmul.f32 %v1257_v13, %v1242_v0 }
 0xe9b   :  { %1261 = vrot.lane.b32.xlu0 %v1259_v14, %s3106_s12 }
 0xf05   :  { %v1090_v15 = vpop.permute.xlu1 %1089 }
 0xf06   :  { %v3476_v16 = vadd.f32 %v3067_v40, %v1090_v15 }
 0xf08   :  { %1266 = vrot.lane.b32.xlu1 %v3476_v16, %s3101_s25 }
 0xf0d   :  { %v1262_v17 = vpop.permute.xlu0 %1261 }
 0xf0e   :  { %v3480_v18 = vadd.f32 %v3069_v10, %v1262_v17 }
 0xf10   :  { %1438 = vrot.lane.b32.xlu0 %v3480_v18, %s3101_s25 }
 0xf7a   :  { %v1267_v19 = vpop.permute.xlu1 %1266 }
 0xf7b   :  { %2738 = vmatmul.mubr.msk.f32.vlgmr.msra.gmra.mrb[20].mxu1 %vm247_vm2, %v1267_v19  ;;  %2749 = vmatmul.mubr.msk.f32.vlgmr.msra.gmra.mrb[10].mxu0 %vm247_vm2, %v1267_v19 }
 0xf7c   :  { %2934 = vmatpush3.bf16.msra.mxu1 %v3339_v35  ;;  %2759 = vmatprep.mubr.msk.f32.mxu1 %vm3104_vm1, %v3105_v31 }
 0xf7d   :  { %2935 = vmatprep.subr.bf16.mxu1 %v3103_v24  ;;  %2940 = vmatpush3.bf16.msra.mxu0 %v3216_v27 }
 0xf7e   :  { %2941 = vmatprep.subr.bf16.mxu0 %v3103_v24  ;;  %2770 = vmatprep.mubr.msk.f32.mxu0 %vm3104_vm1, %v3105_v31 }
 0xf80   :  { %2937 = vmatpush3.bf16.msra.mxu1 %v3350_v46 }
 0xf81   :  { %2944 = vmatprep.subr.bf16.mxu1 %v3103_v24  ;;  %2943 = vmatpush3.bf16.msra.mxu0 %v3233_v32 }
 0xf82   :  { %v1439_v7 = vpop.permute.xlu0 %1438  ;;  %2950 = vmatprep.subr.bf16.mxu0 %v3103_v24 }
 0xf83   :  { %2760 = vmatmul.mubr.msk.f32.vlgmr.msra.gmra.mrb[22].mxu1 %vm247_vm2, %v1439_v7 }
 0xf84   :  { %2946 = vmatpush3.bf16.msra.mxu1 %v3283_v48  ;;  %2781 = vmatprep.mubr.msk.f32.mxu1 %vm3104_vm1, %v3105_v31 }
 0xf85   :  { %2947 = vmatprep.subr.bf16.mxu1 %v3103_v24 }
 0xf88   :  { %2949 = vmatpush3.bf16.msra.mxu1 %v3293_v52 }
 0xf89   :  { %2956 = vmatprep.subr.bf16.mxu1 %v3103_v24 }
0x104e   :  { %v1336_v20 = vpop.f32.mrb[20].mxu1  ;;  %v1433_v21 = vpop.f32.mrb[10].mxu0 }
0x104f   :  { %v1337_v23 = vadd.f32 %v3180_v4, %v1336_v20  ;;  %v2739_v25 = vpop.f32.mrb[21].mxu1  ;;  %v2750_v26 = vpop.f32.mrb[11].mxu0  ;;  %v1434_v38 = vadd.f32 %v3312_v56, %v1433_v21 }
0x1051   :  { %1346 = vrot.lane.b32.xlu1 %v1337_v23, %s3101_s25  ;;  %v1340_v36 = vadd.f32 %v1337_v23, %v205_v34  ;;  %v210_v23 = vadd.f32 %v3191_v6, %v3275_v45 }
0x1053   :  { %v1341_v37 = vmul.f32 0.5, %v1340_v36 }
0x1055   :  { %3070 = vtanh.f32 %v1341_v37 }
0x1056   :  { %v1508_v29 = vpop.f32.mrb[22].mxu1 }
0x1057   :  { %v1509_v28 = vadd.f32 %v3261_v39, %v1508_v29  ;;  %v2761_v33 = vpop.f32.mrb[23].mxu1 }
0x1059   :  { %1518 = vrot.lane.b32.xlu0 %v1509_v28, %s3101_s25  ;;  %v1512_v49 = vadd.f32 %v1509_v28, %v1434_v38 }
0x105b   :  { %v1513_v50 = vmul.f32 0.5, %v1512_v49 }
0x105d   :  { %3072 = vtanh.f32 %v1513_v50 }
0x105f   :  { %v3071_v51 = vpop.eup %3070 }
0x1060   :  { %v1343_v53 = vmul.f32 0.5, %v3071_v51 }
0x1062   :  { %v1344_v54 = vadd.f32 0.5, %v1343_v53 }
0x1067   :  { %v3073_v55 = vpop.eup %3072 }
0x1068   :  { %v1515_v59 = vmul.f32 0.5, %v3073_v55 }
0x106a   :  { %v1516_v60 = vadd.f32 0.5, %v1515_v59 }
0x10c3   :  { %v1347_v57 = vpop.permute.xlu1 %1346 }
0x10c4   :  { %v1349_v58 = vmul.f32 %v1347_v57, %v1344_v54 }
0x10c6   :  { %1351 = vrot.lane.b32.xlu1 %v1349_v58, %s3101_s25 }
0x10cb   :  { %v1519_v61 = vpop.permute.xlu0 %1518 }
0x10cc   :  { %v1521_v42 = vmul.f32 %v1519_v61, %v1516_v60 }
0x10ce   :  { %1523 = vrot.lane.b32.xlu0 %v1521_v42, %s3101_s25 }
0x1138   :  { %v1352_v62 = vpop.permute.xlu1 %1351 }
0x1139   :  { %v1354_v63 = vadd.f32 %v1352_v62, %v205_v34 }
0x113b   :  { %3074 = vtanh.f32 %v1354_v63 }
0x1140   :  { %v1524_v0 = vpop.permute.xlu0 %1523 }
0x1141   :  { %v1526_v1 = vadd.f32 %v1524_v0, %v1434_v38 }
0x1143   :  { %3076 = vtanh.f32 %v1526_v1 }
0x1145   :  { %v3075_v43 = vpop.eup %3074 }
0x1146   :  { %v1356_v2 = vsub.f32 %v3476_v16, %v3075_v43 }
0x1148   :  { %1358 = vrot.lane.b32.xlu1 %v1356_v2, %s3102_s29 }
0x114d   :  { %v3077_v3 = vpop.eup %3076 }
0x114e   :  { %v1528_v5 = vsub.f32 %v3480_v18, %v3077_v3 }
0x1150   :  { %1530 = vrot.lane.b32.xlu0 %v1528_v5, %s3102_s29 }
0x11ba   :  { %v1359_v8 = vpop.permute.xlu1 %1358 }
0x11bb   :  { %v1361_v40 = vmul.f32 %v1359_v8, %v1344_v54 }
0x11bd   :  { %1363 = vrot.lane.b32.xlu1 %v1361_v40, %s3106_s12 }
0x11c2   :  { %v1531_v9 = vpop.permute.xlu0 %1530 }
0x11c3   :  { %v1533_v10 = vmul.f32 %v1531_v9, %v1516_v60 }
0x11c5   :  { %1535 = vrot.lane.b32.xlu0 %v1533_v10, %s3106_s12 }
0x122f   :  { %v1364_v11 = vpop.permute.xlu1 %1363 }
0x1230   :  { %v3520_v12 = vadd.f32 %v3075_v43, %v1364_v11 }
0x1232   :  { %1540 = vrot.lane.b32.xlu1 %v3520_v12, %s3101_s25 }
0x1237   :  { %v1536_v41 = vpop.permute.xlu0 %1535 }
0x1238   :  { %v3524_v13 = vadd.f32 %v3077_v3, %v1536_v41 }
0x123a   :  { %1712 = vrot.lane.b32.xlu0 %v3524_v13, %s3101_s25 }
0x12a4   :  { %v1541_v14 = vpop.permute.xlu1 %1540 }
0x12a5   :  { %2771 = vmatmul.mubr.msk.f32.vlgmr.msra.gmra.mrb[12].mxu0 %vm247_vm2, %v1541_v14  ;;  %2782 = vmatmul.mubr.msk.f32.vlgmr.msra.gmra.mrb[24].mxu1 %vm247_vm2, %v1541_v14 }
0x12a6   :  { %2952 = vmatpush3.bf16.msra.mxu0 %v3339_v35  ;;  %2792 = vmatprep.mubr.msk.f32.mxu0 %vm3104_vm1, %v3105_v31 }
0x12a7   :  { %2953 = vmatprep.subr.bf16.mxu0 %v3103_v24  ;;  %2958 = vmatpush3.bf16.msra.mxu1 %v3216_v27 }
0x12a8   :  { %2959 = vmatprep.subr.bf16.mxu1 %v3103_v24  ;;  %2803 = vmatprep.mubr.msk.f32.mxu1 %vm3104_vm1, %v3105_v31 }
0x12aa   :  { %2955 = vmatpush3.bf16.msra.mxu0 %v3350_v46 }
0x12ab   :  { %2962 = vmatprep.subr.bf16.mxu0 %v3103_v24  ;;  %2961 = vmatpush3.bf16.msra.mxu1 %v3233_v32 }
0x12ac   :  { %v3541_v15 = vpop.permute.xlu0 %1712  ;;  %2968 = vmatprep.subr.bf16.mxu1 %v3103_v24 }
0x12ad   :  { %2793 = vmatmul.mubr.msk.f32.vlgmr.msra.gmra.mrb[14].mxu0 %vm247_vm2, %v3541_v15 }
0x12ae   :  { %2964 = vmatpush3.bf16.msra.mxu0 %v3283_v48  ;;  %2814 = vmatprep.mubr.msk.f32.mxu0 %vm3104_vm1, %v3105_v31 }
0x12af   :  { %2965 = vmatprep.subr.bf16.mxu0 %v3103_v24 }
0x12b2   :  { %2967 = vmatpush3.bf16.msra.mxu0 %v3293_v52 }
0x12b3   :  { %2974 = vmatprep.subr.bf16.mxu0 %v3103_v24 }
0x1378   :  { %v1610_v27 = vpop.f32.mrb[12].mxu0  ;;  %v1707_v32 = vpop.f32.mrb[24].mxu1 }
0x1379   :  { %v1611_v16 = vadd.f32 %v3180_v4, %v1610_v27  ;;  %v2772_v17 = vpop.f32.mrb[13].mxu0  ;;  %v2783_v19 = vpop.f32.mrb[25].mxu1  ;;  %v1708_v29 = vadd.f32 %v3312_v56, %v1707_v32 }
0x137b   :  { %1620 = vrot.lane.b32.xlu1 %v1611_v16, %s3101_s25  ;;  %v1614_v25 = vadd.f32 %v1611_v16, %v210_v23 }
0x137d   :  { %v1615_v26 = vmul.f32 0.5, %v1614_v25 }
0x137f   :  { %3078 = vtanh.f32 %v1615_v26 }
0x1380   :  { %v1782_v7 = vpop.f32.mrb[14].mxu0 }
0x1381   :  { %v1783_v20 = vadd.f32 %v3261_v39, %v1782_v7  ;;  %v2794_v21 = vpop.f32.mrb[15].mxu0 }
0x1383   :  { %1792 = vrot.lane.b32.xlu0 %v1783_v20, %s3101_s25  ;;  %v1786_v28 = vadd.f32 %v1783_v20, %v1708_v29 }
0x1385   :  { %v1787_v4 = vmul.f32 0.5, %v1786_v28 }
0x1387   :  { %3080 = vtanh.f32 %v1787_v4 }
0x1389   :  { %v3079_v33 = vpop.eup %3078 }
0x138a   :  { %v1617_v34 = vmul.f32 0.5, %v3079_v33 }
0x138c   :  { %v1618_v36 = vadd.f32 0.5, %v1617_v34 }
0x1391   :  { %v3081_v37 = vpop.eup %3080 }
0x1392   :  { %v1789_v50 = vmul.f32 0.5, %v3081_v37 }
0x1394   :  { %v1790_v51 = vadd.f32 0.5, %v1789_v50 }
0x13ed   :  { %v1621_v38 = vpop.permute.xlu1 %1620 }
0x13ee   :  { %v1623_v49 = vmul.f32 %v1621_v38, %v1618_v36 }
0x13f0   :  { %1625 = vrot.lane.b32.xlu1 %v1623_v49, %s3101_s25 }
0x13f5   :  { %v1793_v53 = vpop.permute.xlu0 %1792 }
0x13f6   :  { %v1795_v6 = vmul.f32 %v1793_v53, %v1790_v51 }
0x13f8   :  { %1797 = vrot.lane.b32.xlu0 %v1795_v6, %s3101_s25 }
0x1462   :  { %v1626_v45 = vpop.permute.xlu1 %1625 }
0x1463   :  { %v1628_v54 = vadd.f32 %v1626_v45, %v210_v23 }
0x1465   :  { %3082 = vtanh.f32 %v1628_v54 }
0x146a   :  { %v1798_v55 = vpop.permute.xlu0 %1797 }
0x146b   :  { %v1800_v57 = vadd.f32 %v1798_v55, %v1708_v29 }
0x146d   :  { %3084 = vtanh.f32 %v1800_v57 }
0x146f   :  { %v3083_v58 = vpop.eup %3082 }
0x1470   :  { %v1630_v59 = vsub.f32 %v3520_v12, %v3083_v58 }
0x1472   :  { %1632 = vrot.lane.b32.xlu1 %v1630_v59, %s3102_s29 }
0x1477   :  { %v3085_v60 = vpop.eup %3084 }
0x1478   :  { %v1802_v61 = vsub.f32 %v3524_v13, %v3085_v60 }
0x147a   :  { %1804 = vrot.lane.b32.xlu0 %v1802_v61, %s3102_s29  ;;  %v3100_v61 = vld [vmem:[%s3751_s8] ss:$0 sm:$0xff] }
0x14e4   :  { %v1633_v42 = vpop.permute.xlu1 %1632 }
0x14e5   :  { %v1635_v62 = vmul.f32 %v1633_v42, %v1618_v36 }
0x14e7   :  { %1637 = vrot.lane.b32.xlu1 %v1635_v62, %s3106_s12 }
0x14ec   :  { %v1805_v63 = vpop.permute.xlu0 %1804 }
0x14ed   :  { %v1807_v0 = vmul.f32 %v1805_v63, %v1790_v51 }
0x14ef   :  { %1809 = vrot.lane.b32.xlu0 %v1807_v0, %s3106_s12 }
0x1559   :  { %v1638_v1 = vpop.permute.xlu1 %1637 }
0x155a   :  { %v3567_v43 = vadd.f32 %v3083_v58, %v1638_v1 }
0x155c   :  { %1814 = vrot.lane.b32.xlu1 %v3567_v43, %s3101_s25 }
0x1561   :  { %v1810_v2 = vpop.permute.xlu0 %1809 }
0x1562   :  { %v3571_v3 = vadd.f32 %v3085_v60, %v1810_v2 }
0x1564   :  { %1986 = vrot.lane.b32.xlu0 %v3571_v3, %s3101_s25 }
0x15ce   :  { %v1815_v5 = vpop.permute.xlu1 %1814 }
0x15cf   :  { %2804 = vmatmul.mubr.msk.f32.vlgmr.msra.gmra.mrb[26].mxu1 %vm247_vm2, %v1815_v5  ;;  %2815 = vmatmul.mubr.msk.f32.vlgmr.msra.gmra.mrb[16].mxu0 %vm247_vm2, %v1815_v5 }
0x15d0   :  { %2970 = vmatpush3.bf16.msra.mxu1 %v3339_v35  ;;  %2825 = vmatprep.mubr.msk.f32.mxu1 %vm3104_vm1, %v3105_v31 }
0x15d1   :  { %2971 = vmatprep.subr.bf16.mxu1 %v3103_v24  ;;  %2976 = vmatpush3.bf16.msra.mxu0 %v3283_v48 }
0x15d2   :  { %2977 = vmatprep.subr.bf16.mxu0 %v3103_v24  ;;  %2836 = vmatprep.mubr.msk.f32.mxu0 %vm3104_vm1, %v3105_v31 }
0x15d4   :  { %2973 = vmatpush3.bf16.msra.mxu1 %v3350_v46 }
0x15d5   :  { %2979 = vmatpush3.bf16.msra.mxu0 %v3293_v52  ;;  %2980 = vmatprep.subr.bf16.mxu1 %v3103_v24  ;;  %v3098_v52 = vld [vmem:[%s3748_s4] ss:$0 sm:$0xff] }
0x15d6   :  { %v1987_v8 = vpop.permute.xlu0 %1986 }
0x15d7   :  { %2826 = vmatmul.mubr.msk.f32.vlgmr.msra.gmra.mrb[28].mxu1 %vm247_vm2, %v1987_v8 }
0x15d8   :  { %2982 = vmatpush3.bf16.msra.mxu1 %v3339_v35  ;;  %2847 = vmatprep.mubr.msk.f32.mxu1 %vm3104_vm1, %v3105_v31 }
0x15d9   :  { %2983 = vmatprep.subr.bf16.mxu1 %v3103_v24  ;;  %v3099_v24 = vld [vmem:[%s3749_s3] ss:$0 sm:$0xff] }
0x15da   :  { %v215_v31 = vadd.f32 %v3099_v24, %v3273_v44  ;;  %v2288_v24 = vld [vmem:[%s3755_s9 + $0x8] sm:$0xff] }
0x15dc   :  { %2985 = vmatpush3.bf16.msra.mxu1 %v3350_v46 }
0x16a2   :  { %v1884_v48 = vpop.f32.mrb[26].mxu1  ;;  %v1981_v40 = vpop.f32.mrb[16].mxu0 }
0x16a3   :  { %v1885_v9 = vadd.f32 %v3098_v52, %v1884_v48  ;;  %v2805_v10 = vpop.f32.mrb[27].mxu1  ;;  %v2816_v11 = vpop.f32.mrb[17].mxu0  ;;  %v1982_v14 = vadd.f32 %v3312_v56, %v1981_v40 }
0x16a4   :  { %v2303_v11 = vld [vmem:[%s3755_s9 + $0x80] sm:$0xff] }
0x16a5   :  { %1894 = vrot.lane.b32.xlu0 %v1885_v9, %s3101_s25  ;;  %v1888_v46 = vadd.f32 %v1885_v9, %v215_v31 }
0x16a7   :  { %v1889_v13 = vmul.f32 0.5, %v1888_v46 }
0x16a9   :  { %3086 = vtanh.f32 %v1889_v13  ;;  %v2289_v13 = vld [vmem:[%s3755_s9 + $0x10] sm:$0xff] }
0x16aa   :  { %v2056_v12 = vpop.f32.mrb[28].mxu1 }
0x16ab   :  { %v2057_v35 = vadd.f32 %v3261_v39, %v2056_v12  ;;  %v2827_v41 = vpop.f32.mrb[29].mxu1  ;;  %v2304_v12 = vld [vmem:[%s3755_s9 + $0x88] sm:$0xff] }
0x16ac   :  { %v2986_v41 = vpack.c.bf16 %v2304_v12, %v2303_v11 }
0x16ad   :  { %2066 = vrot.lane.b32.xlu1 %v2057_v35, %s3101_s25  ;;  %v2060_v27 = vadd.f32 %v2057_v35, %v1982_v14  ;;  %v2287_v35 = vld [vmem:[%s3755_s9] sm:$0xff] }
0x16ae   :  { %2987 = vmatprep.subr.bf16.mxu0 %v2986_v41 }
0x16af   :  { %v2061_v32 = vmul.f32 0.5, %v2060_v27  ;;  %v2307_v27 = vld [vmem:[%s3755_s9 + $0xa0] sm:$0xff] }
0x16b1   :  { %3088 = vtanh.f32 %v2061_v32  ;;  %v2308_v32 = vld [vmem:[%s3755_s9 + $0xa8] sm:$0xff] }
0x16b3   :  { %v3087_v16 = vpop.eup %3086 }
0x16b4   :  { %v1891_v17 = vmul.f32 0.5, %v3087_v16 }
0x16b6   :  { %v1892_v39 = vadd.f32 0.5, %v1891_v17 }
0x16bb   :  { %v3089_v19 = vpop.eup %3088 }
0x16bc   :  { %v2063_v21 = vmul.f32 0.5, %v3089_v19  ;;  %v2291_v19 = vld [vmem:[%s3755_s9 + $0x20] sm:$0xff] }
0x16be   :  { %v2064_v23 = vadd.f32 0.5, %v2063_v21  ;;  %v2309_v21 = vld [vmem:[%s3755_s9 + $0xb0] sm:$0xff] }
0x1717   :  { %v1895_v7 = vpop.permute.xlu0 %1894 }
0x1718   :  { %v1897_v20 = vmul.f32 %v1895_v7, %v1892_v39  ;;  %v2292_v7 = vld [vmem:[%s3755_s9 + $0x28] sm:$0xff] }
0x171a   :  { %1899 = vrot.lane.b32.xlu0 %v1897_v20, %s3101_s25 }
0x171f   :  { %v2067_v25 = vpop.permute.xlu1 %2066 }
0x1720   :  { %v2069_v44 = vmul.f32 %v2067_v25, %v2064_v23  ;;  %v2996_v25 = vpack.c.bf16 %v2292_v7, %v2291_v19 }
0x1722   :  { %2071 = vrot.lane.b32.xlu1 %v2069_v44, %s3101_s25 }
0x178c   :  { %v1900_v26 = vpop.permute.xlu0 %1899 }
0x178d   :  { %v1902_v29 = vadd.f32 %v1900_v26, %v215_v31  ;;  %v2988_v31 = vpack.c.bf16 %v2288_v24, %v2287_v35  ;;  %v2293_v26 = vld [vmem:[%s3755_s9 + $0x30] sm:$0xff] }
0x178f   :  { %3090 = vtanh.f32 %v1902_v29  ;;  %v2294_v29 = vld [vmem:[%s3755_s9 + $0x38] sm:$0xff] }
0x1794   :  { %v2072_v28 = vpop.permute.xlu1 %2071 }
0x1795   :  { %v2074_v4 = vadd.f32 %v2072_v28, %v1982_v14  ;;  %v2290_v14 = vld [vmem:[%s3755_s9 + $0x18] sm:$0xff]  ;;  %v2311_v28 = vld [vmem:[%s3755_s9 + $0xc0] sm:$0xff] }
0x1796   :  { %v2992_v16 = vpack.c.bf16 %v2290_v14, %v2289_v13 }
0x1797   :  { %3092 = vtanh.f32 %v2074_v4  ;;  %v2312_v4 = vld [vmem:[%s3755_s9 + $0xc8] sm:$0xff] }
0x1799   :  { %v3091_v33 = vpop.eup %3090 }
0x179a   :  { %v1904_v34 = vsub.f32 %v3567_v43, %v3091_v33 }
0x179c   :  { %1906 = vrot.lane.b32.xlu0 %v1904_v34, %s3102_s29  ;;  %v3002_v34 = vpack.c.bf16 %v2312_v4, %v2311_v28 }
0x17a1   :  { %v3093_v36 = vpop.eup %3092 }
0x17a2   :  { %v2076_v37 = vsub.f32 %v3571_v3, %v3093_v36 }
0x17a4   :  { %2078 = vrot.lane.b32.xlu1 %v2076_v37, %s3102_s29  ;;  %v2296_v37 = vld [vmem:[%s3755_s9 + $0x48] sm:$0xff] }
0x180e   :  { %v1907_v38 = vpop.permute.xlu0 %1906 }
0x180f   :  { %v1909_v49 = vmul.f32 %v1907_v38, %v1892_v39  ;;  %v2994_v39 = vpack.c.bf16 %v2308_v32, %v2307_v27  ;;  %v2313_v38 = vld [vmem:[%s3755_s9 + $0xd0] sm:$0xff] }
0x1811   :  { %1911 = vrot.lane.b32.xlu0 %v1909_v49, %s3106_s12  ;;  %v2314_v49 = vld [vmem:[%s3755_s9 + $0xd8] sm:$0xff] }
0x1816   :  { %v2079_v50 = vpop.permute.xlu1 %2078 }
0x1817   :  { %v2081_v51 = vmul.f32 %v2079_v50, %v2064_v23  ;;  %v2310_v23 = vld [vmem:[%s3755_s9 + $0xb8] sm:$0xff] }
0x1818   :  { %v2998_v44 = vpack.c.bf16 %v2310_v23, %v2309_v21 }
0x1819   :  { %2083 = vrot.lane.b32.xlu1 %v2081_v51, %s3106_s12  ;;  %v3006_v51 = vpack.c.bf16 %v2314_v49, %v2313_v38 }
0x1883   :  { %v1912_v53 = vpop.permute.xlu0 %1911 }
0x1884   :  { %v1914_v6 = vadd.f32 %v3091_v33, %v1912_v53  ;;  %v3000_v33 = vpack.c.bf16 %v2294_v29, %v2293_v26  ;;  %v2297_v53 = vld [vmem:[%s3755_s9 + $0x50] sm:$0xff] }
0x1886   :  { %2088 = vrot.lane.b32.xlu0 %v1914_v6, %s3101_s25  ;;  %v2298_v6 = vld [vmem:[%s3755_s9 + $0x58] sm:$0xff] }
0x188b   :  { %v2084_v45 = vpop.permute.xlu1 %2083 }
0x188c   :  { %v3614_v54 = vadd.f32 %v3093_v36, %v2084_v45  ;;  %v2295_v36 = vld [vmem:[%s3755_s9 + $0x40] sm:$0xff] }
0x188d   :  { %v3004_v50 = vpack.c.bf16 %v2296_v37, %v2295_v36  ;;  %v2315_v45 = vld [vmem:[%s3755_s9 + $0xe0] sm:$0xff] }
0x188e   :  { %2163 = vrot.lane.b32.xlu1 %v3614_v54, %s3101_s25 }
0x18f8   :  { %v2089_v55 = vpop.permute.xlu0 %2088 }
0x18f9   :  { %2837 = vmatmul.mubr.msk.f32.vlgmr.msra.gmra.mrb[18].mxu0 %vm247_vm2, %v2089_v55  ;;  %v2316_v55 = vld [vmem:[%s3755_s9 + $0xe8] sm:$0xff] }
0x18fa   :  { %2989 = vmatpush3.bf16.msra.mxu0 %v2988_v31 }
0x1900   :  { %v2164_v57 = vpop.permute.xlu1 %2163 }
0x1901   :  { %2848 = vmatmul.mubr.msk.f32.vlgmr.msra.gmra.mrb[30].mxu1 %vm247_vm2, %v2164_v57  ;;  %v3008_v57 = vpack.c.bf16 %v2298_v6, %v2297_v53 }
0x19cc   :  { %v2158_v58 = vpop.f32.mrb[18].mxu0 }
0x19cd   :  { %v2838_v59 = vpop.f32.mrb[19].mxu0  ;;  %v2159_v63 = vadd.f32 %v3312_v56, %v2158_v58  ;;  %v3024_v56 = vpack.i.bf16 %v3392_v30, %v3571_v3  ;;  %v2305_v30 = vld [vmem:[%s3755_s9 + $0x90] sm:$0xff]  ;;  %v2306_v3 = vld [vmem:[%s3755_s9 + $0x98] sm:$0xff]  ;;  %v3010_v58 = vpack.c.bf16 %v2316_v55, %v2315_v45 }
0x19ce   :  { %v2990_v46 = vpack.c.bf16 %v2306_v3, %v2305_v30  ;;  %v2299_v59 = vld [vmem:[%s3755_s9 + $0x60] sm:$0xff] }
0x19d0   :  { %2991 = vmatprep.subr.bf16.mxu0 %v2990_v46 }
0x19d1   :  { %2993 = vmatpush3.bf16.msra.mxu0 %v2992_v16 }
0x19d2   :  { %2995 = vmatprep.subr.bf16.mxu0 %v2994_v39 }
0x19d4   :  { %v2233_v60 = vpop.f32.mrb[30].mxu1 }
0x19d5   :  { %v2234_v42 = vadd.f32 %v3100_v61, %v2233_v60  ;;  %v2849_v62 = vpop.f32.mrb[31].mxu1  ;;  %2997 = vmatpush3.bf16.msra.mxu0 %v2996_v25  ;;  %v2300_v60 = vld [vmem:[%s3755_s9 + $0x68] sm:$0xff] }
0x19d6   :  { %2999 = vmatprep.subr.bf16.mxu0 %v2998_v44  ;;  %v3012_v61 = vpack.c.bf16 %v2300_v60, %v2299_v59  ;;  %v2318_v62 = vld [vmem:[%s3755_s9 + $0xf8] sm:$0xff] }
0x19d7   :  { %2243 = vrot.lane.b32.xlu1 %v2234_v42, %s3101_s25  ;;  %v2237_v0 = vadd.f32 %v2234_v42, %v2159_v63  ;;  %v2317_v42 = vld [vmem:[%s3755_s9 + $0xf0] sm:$0xff] }
0x19d9   :  { %v2238_v1 = vmul.f32 0.5, %v2237_v0  ;;  %3001 = vmatpush3.bf16.msra.mxu0 %v3000_v33  ;;  %v2301_v0 = vld [vmem:[%s3755_s9 + $0x70] sm:$0xff] }
0x19da   :  { %3003 = vmatprep.subr.bf16.mxu0 %v3002_v34 }
0x19db   :  { %3094 = vtanh.f32 %v2238_v1  ;;  %v2302_v1 = vld [vmem:[%s3755_s9 + $0x78] sm:$0xff] }
0x19dd   :  { %3005 = vmatpush3.bf16.msra.mxu0 %v3004_v50 }
0x19de   :  { %3007 = vmatprep.subr.bf16.mxu0 %v3006_v51 }
0x19e1   :  { %3009 = vmatpush3.bf16.msra.mxu0 %v3008_v57 }
0x19e2   :  { %3011 = vmatprep.subr.bf16.mxu0 %v3010_v58 }
0x19e5   :  { %v3095_v43 = vpop.eup %3094  ;;  %3013 = vmatpush3.bf16.msra.mxu0 %v3012_v61 }
0x19e6   :  { %v2240_v2 = vmul.f32 0.5, %v3095_v43  ;;  %v3016_v43 = vpack.c.bf16 %v2302_v1, %v2301_v0 }
0x19e8   :  { %v2241_v5 = vadd.f32 0.5, %v2240_v2 }
0x1a49   :  { %v2244_v8 = vpop.permute.xlu1 %2243 }
0x1a4a   :  { %v2246_v48 = vmul.f32 %v2244_v8, %v2241_v5 }
0x1a4c   :  { %2248 = vrot.lane.b32.xlu0 %v2246_v48, %s3101_s25 }
0x1abe   :  { %v2249_v40 = vpop.permute.xlu0 %2248 }
0x1abf   :  { %v2251_v52 = vadd.f32 %v2249_v40, %v2159_v63  ;;  %v3014_v63 = vpack.c.bf16 %v2318_v62, %v2317_v42 }
0x1ac1   :  { %3096 = vtanh.f32 %v2251_v52  ;;  %3015 = vmatprep.subr.bf16.mxu0 %v3014_v63 }
0x1ac2   :  { %3017 = vmatpush3.bf16.msra.mxu0 %v3016_v43 }
0x1acb   :  { %v3626_v9 = vpop.eup %3096 }
0x1acc   :  { %v2253_v10 = vsub.f32 %v3614_v54, %v3626_v9 }
0x1ace   :  { %2255 = vrot.lane.b32.xlu1 %v2253_v10, %s3102_s29 }
0x1ad2   :  { %3025 = vrot.lane.b32.xlu1 %v3024_v56, %s3102_s29 }
0x1b40   :  { %v2256_v17 = vpop.permute.xlu1 %2255 }
0x1b41   :  { %v2258_v20 = vmul.f32 %v2256_v17, %v2241_v5 }
0x1b43   :  { %2260 = vrot.lane.b32.xlu0 %v2258_v20, %s3106_s12 }
0x1b44   :  { %v3026_v48 = vpop.permute.xlu1 %3025 }
0x1b45   :  { %v3028_v40 = vunpack.i.h.bf16 %v3026_v48  ;;  %v3027_v52 = vunpack.i.l.bf16 %v3026_v48 }
0x1b47   :  { %v2279_v10 = vsel %vm247_vm2, %v3362_v47, %v3028_v40  ;;  %v2284_v56 = vsel %vm247_vm2, %v3541_v15, %v3027_v52  ;;  %v2436_v47 = vld [vmem:[%s3756_s10] ss:$0 sm:$0xff] }
0x1bb5   :  { %v2261_v2 = vpop.permute.xlu0 %2260 }
0x1bb6   :  { %v2263_v5 = vadd.f32 %v3626_v9, %v2261_v2  ;;  %v2285_v9 = vsel %vm2280_vm3, %v2284_v56, %v3614_v54 }
0x1bb8   :  { %v3029_v8 = vpack.i.bf16 %v3480_v18, %v2263_v5  ;;  %v2281_v18 = vsel %vm2280_vm3, %v2279_v10, %v3436_v22 }
0x1bba   :  { %3030 = vrot.lane.b32.xlu0 %v3029_v8, %s3106_s12 }
0x1c2c   :  { %v3031_v11 = vpop.permute.xlu0 %3030 }
0x1c2d   :  { %v3033_v12 = vunpack.i.h.bf16 %v3031_v11  ;;  %v3032_v35 = vunpack.i.l.bf16 %v3031_v11 }
0x1c2f   :  { %v2286_v41 = vsel %vm2282_vm4, %v2285_v9, %v3032_v35  ;;  %v2283_v24 = vsel %vm2282_vm4, %v2281_v18, %v3033_v12 }
0x1c30   :  { %2390 = vmatprep.mubr.f32.mxu0 %v2286_v41 }
0x1c31   :  { %2391 = vmatmul.mubr.f32.vlgmr.msra.gmra.mrb[20].mxu0 %v2283_v24 }
0x1d04   :  { %v2589_v30 = vpop.f32.mrb[20].mxu0 }
0x1d05   :  { %v2590_v3 = vpop.f32.mrb[21].mxu0 }
0x1d06   :  { %v2591_v15 = vadd.f32 %v2590_v3, %v2589_v30 }
0x1d08   :  { %v2393_v31 = vadd.f32 %v2591_v15, %v2436_v47 }
0x1d0a   :  { %2397 = vst.msk [vmem:[%s3757_s11] sm:$0xff] %vm2396_vm5, %v2393_v31 }

</bundles_post_ra>
